<compile_context>
chip_gen: v5e
topology: v5e:2x2
jax: 0.10.0
libtpu: 0.0.40
codegen_flags: <defaults>
</compile_context>

<pallas_src>
import functools

import jax
import jax.numpy as jnp
from jax import lax
from jax.experimental import pallas as pl
from jax.experimental.pallas import tpu as pltpu

_NEG_INF = float("-inf")  # Python float -> jaxpr literal, not a captured const.


# ---------------------------------------------------------------------------
# Kernel bodies
# ---------------------------------------------------------------------------
def _attend(q, k, v, mask, inv_temp, out_dtype, attn_dtype):
    # q: (tq, D), k: (Lk, D), v: (Lk, Dv), mask: (tq, Lk) int8 or None
    qs = q * inv_temp                                        # fold 1/temperature into q

    # scores = qs @ k^T without materializing a transpose of k (contract last dims).
    scores = lax.dot_general(
        qs, k,
        dimension_numbers=(((1,), (1,)), ((), ())),
        preferred_element_type=jnp.float32,
    )                                                        # (tq, Lk) f32

    if mask is not None:
        # torch semantics: masked positions get -inf (fully-masked rows -> NaN).
        scores = jnp.where(mask != 0, _NEG_INF, scores)

    # softmax over last axis (torch dim=2)
    smax = jnp.max(scores, axis=-1, keepdims=True)
    e = jnp.exp(scores - smax)
    denom = jnp.sum(e, axis=-1, keepdims=True)               # (tq, 1)
    inv = pl.reciprocal(denom, approx=True)                  # EUP slot
    inv = inv * (2.0 - denom * inv)                          # one Newton step -> ~f32 exact
    attn = e * inv                                           # broadcast multiply, no divide

    out = jnp.dot(attn.astype(v.dtype), v, preferred_element_type=jnp.float32)
    return out.astype(out_dtype), attn.astype(attn_dtype)


def _sdpa_kernel_nomask(q_ref, k_ref, v_ref, out_ref, attn_ref, *, inv_temp):
    out, attn = _attend(q_ref[0], k_ref[0], v_ref[0], None, inv_temp,
                        out_ref.dtype, attn_ref.dtype)
    out_ref[0] = out
    attn_ref[0] = attn


def _sdpa_kernel_mask(q_ref, k_ref, v_ref, m_ref, out_ref, attn_ref, *, inv_temp):
    out, attn = _attend(q_ref[0], k_ref[0], v_ref[0], m_ref[0], inv_temp,
                        out_ref.dtype, attn_ref.dtype)
    out_ref[0] = out
    attn_ref[0] = attn


# ---------------------------------------------------------------------------
# VMEM-budgeted tile selection
# ---------------------------------------------------------------------------
def _vmem_budget_bytes():
    phys = 64 * 1024 * 1024  # conservative default = v7x per-core VMEM
    try:
        phys = int(pltpu.get_tpu_info().vmem_capacity_bytes)
    except Exception:
        pass
    # ~35% headroom for compiler scratch / semaphores; cap well below 128 MiB parts.
    return min(int(phys * 0.65), 96 * 1024 * 1024)


def _vmem_needed_bytes(block_q, Lk, D, Dv, in_bytes, attn_bytes, has_mask):
    kv = Lk * (D + Dv) * in_bytes                  # K + V, single-buffered, whole Lk
    qb = 2 * block_q * D * in_bytes                # q tile, double-buffered
    ob = 2 * block_q * Dv * in_bytes               # out tile, double-buffered
    ab = 2 * block_q * Lk * attn_bytes             # attn tile, double-buffered (dominant)
    mb = 2 * block_q * Lk * 1 if has_mask else 0   # int8 mask tile
    live = 2 * block_q * Lk * 4                    # f32 scores + exp intermediates
    return kv + qb + ob + ab + mb + live


def _pick_block_q(Lq, Lk, D, Dv, in_bytes, attn_bytes, has_mask, budget):
    cands = [Lq] + [c for c in (1024, 512, 256, 128, 64, 32, 16, 8)
                    if c < Lq and Lq % c == 0]
    for c in cands:
        if _vmem_needed_bytes(c, Lk, D, Dv, in_bytes, attn_bytes, has_mask) <= budget:
            return c
    return cands[-1]


# ---------------------------------------------------------------------------
# Wrapper
# ---------------------------------------------------------------------------
def scaled_dot_product_attention(q, k, v, temperature, mask=None, *,
                                 attn_dtype=None, block_q=None):
    """q: (B, Lq, D), k: (B, Lk, D), v: (B, Lk, Dv) -> (out, attn).

    mask: optional bool/int array broadcastable to (B, Lq, Lk); its batch dim
    is kept as-is (1 or B) so no B-times HBM blow-up.  attn_dtype defaults to
    q.dtype; pass jnp.bfloat16 to halve the dominant attn writeback.
    """
    B, Lq, D = q.shape
    _, Lk, _ = k.shape
    Dv = v.shape[-1]
    inv_temp = 1.0 / float(temperature)
    attn_dtype = q.dtype if attn_dtype is None else jnp.dtype(attn_dtype)

    in_bytes = jnp.dtype(q.dtype).itemsize
    attn_bytes = jnp.dtype(attn_dtype).itemsize
    budget = _vmem_budget_bytes()

    if block_q is None:
        block_q = _pick_block_q(Lq, Lk, D, Dv, in_bytes, attn_bytes,
                                mask is not None, budget)
    assert Lq % block_q == 0, "block_q must divide Lq"
    nq = Lq // block_q
    grid = (B, nq)

    # K/V: whole Lk, same block for every q tile of a batch element.
    kv_map = lambda b, qi: (b, 0, 0)
    if nq > 1:
        # Block index is constant along qi -> single-buffer to halve K/V VMEM.
        k_spec = pl.BlockSpec((1, Lk, D), kv_map,
                              pipeline_mode=pl.Buffered(buffer_count=1))
        v_spec = pl.BlockSpec((1, Lk, Dv), kv_map,
                              pipeline_mode=pl.Buffered(buffer_count=1))
    else:
        k_spec = pl.BlockSpec((1, Lk, D), kv_map)
        v_spec = pl.BlockSpec((1, Lk, Dv), kv_map)

    in_specs = [
        pl.BlockSpec((1, block_q, D), lambda b, qi: (b, qi, 0)),
        k_spec,
        v_spec,
    ]
    inputs = [q, k, v]

    if mask is None:
        # Specialized path: no mask array is materialized or DMA'd at all.
        kernel = functools.partial(_sdpa_kernel_nomask, inv_temp=inv_temp)
    else:
        kernel = functools.partial(_sdpa_kernel_mask, inv_temp=inv_temp)
        if mask.ndim == 2:
            mask = mask[None]
        mB = mask.shape[0]
        assert mB in (1, B), "mask batch dim must be 1 or B"
        # Broadcast only over Lq/Lk (cheap), never over batch.
        mask_i8 = jnp.broadcast_to(mask, (mB, Lq, Lk)).astype(jnp.int8)
        if mB == 1:
            m_map = lambda b, qi: (0, qi, 0)
        else:
            m_map = lambda b, qi: (b, qi, 0)
        in_specs.append(pl.BlockSpec((1, block_q, Lk), m_map))
        inputs.append(mask_i8)

    need = _vmem_needed_bytes(block_q, Lk, D, Dv, in_bytes, attn_bytes,
                              mask is not None)
    vmem_limit = int(min(max(budget, need + (4 << 20)), 112 * 1024 * 1024))

    out, attn = pl.pallas_call(
        kernel,
        out_shape=(
            jax.ShapeDtypeStruct((B, Lq, Dv), q.dtype),
            jax.ShapeDtypeStruct((B, Lq, Lk), attn_dtype),
        ),
        grid_spec=pltpu.PrefetchScalarGridSpec(
            num_scalar_prefetch=0,
            grid=grid,
            in_specs=in_specs,
            out_specs=[
                pl.BlockSpec((1, block_q, Dv), lambda b, qi: (b, qi, 0)),
                pl.BlockSpec((1, block_q, Lk), lambda b, qi: (b, qi, 0)),
            ],
        ),
        compiler_params=pltpu.CompilerParams(
            # B parallel / qi arbitrary: the v7x 2-TC split lands on the batch
            # axis, preserving K/V residency across q tiles of one batch.
            dimension_semantics=("parallel", "arbitrary"),
            vmem_limit_bytes=vmem_limit,
        ),
    )(*inputs)
    return out, attn


# ---------------------------------------------------------------------------
# Pure-JAX reference + demo
# ---------------------------------------------------------------------------
def _reference(q, k, v, temperature, mask=None):
    attn = jnp.einsum("bqd,bkd->bqk", q, k) / temperature
    if mask is not None:
        attn = jnp.where(mask, -jnp.inf, attn)
    attn = jax.nn.softmax(attn, axis=2)
    out = jnp.einsum("bqk,bkd->bqd", attn, v)
    return out, attn


if __name__ == "__main__":
    key = jax.random.PRNGKey(0)
    kq, kk, kv = jax.random.split(key, 3)

    # Small lane-dense demo shapes (Lk = 128 keeps the attn store unmasked).
    B, Lq, Lk, D, Dv = 2, 256, 128, 32, 32
    temperature = float(D) ** 0.5  # typical value: sqrt(d_k)

    q = jax.random.normal(kq, (B, Lq, D), dtype=jnp.float32)
    k = jax.random.normal(kk, (B, Lk, D), dtype=jnp.float32)
    v = jax.random.normal(kv, (B, Lk, Dv), dtype=jnp.float32)

    # --- 1) unmasked path (no mask DMA at all), auto block_q ---
    out, attn = scaled_dot_product_attention(q, k, v, temperature)
    jax.block_until_ready((out, attn))
    ref_out, ref_attn = _reference(q, k, v, temperature)
    assert jnp.allclose(out, ref_out, atol=1e-5, rtol=1e-5), "output mismatch (no mask)"
    assert jnp.allclose(attn, ref_attn, atol=1e-5, rtol=1e-5), "attn mismatch (no mask)"

    # --- 2) batch-1 padding mask (kept at (1, Lq, Lk) in HBM, no B-broadcast);
    #        forced q tiling to exercise the Buffered(1) K/V path ---
    pad_mask = (jnp.arange(Lk)[None, None, :] >= Lk - 16)  # (1, 1, Lk), no fully-masked rows
    out_m, attn_m = scaled_dot_product_attention(q, k, v, temperature,
                                                 mask=pad_mask, block_q=64)
    jax.block_until_ready((out_m, attn_m))
    ref_out_m, ref_attn_m = _reference(q, k, v, temperature, mask=pad_mask)
    assert jnp.allclose(out_m, ref_out_m, atol=1e-5, rtol=1e-5), "output mismatch (pad mask)"
    assert jnp.allclose(attn_m, ref_attn_m, atol=1e-5, rtol=1e-5), "attn mismatch (pad mask)"

    # --- 3) per-batch mask (batch dim == B): batch 0 causal-style, batch 1 open ---
    causal0 = jnp.arange(Lk)[None, :] > jnp.arange(Lq)[:, None]      # (Lq, Lk)
    mask_b = jnp.stack([causal0, jnp.zeros_like(causal0)], axis=0)   # (B, Lq, Lk)
    out_c, attn_c = scaled_dot_product_attention(q, k, v, temperature, mask=mask_b)
    jax.block_until_ready((out_c, attn_c))
    ref_out_c, ref_attn_c = _reference(q, k, v, temperature, mask=mask_b)
    assert jnp.allclose(out_c, ref_out_c, atol=1e-5, rtol=1e-5), "output mismatch (batched mask)"
    assert jnp.allclose(attn_c, ref_attn_c, atol=1e-5, rtol=1e-5), "attn mismatch (batched mask)"

    print("KERNEL_OK")
</pallas_src>

<mosaic_0001>
module attributes {stable_mosaic.version = 11 : i64} {
  func.func @_sdpa_kernel_nomask(%arg0: i32, %arg1: i32, %arg2: memref<1x256x32xf32, #tpu.memory_space<vmem>>, %arg3: memref<1x128x32xf32, #tpu.memory_space<vmem>>, %arg4: memref<1x128x32xf32, #tpu.memory_space<vmem>>, %arg5: memref<1x256x32xf32, #tpu.memory_space<vmem>>, %arg6: memref<1x256x128xf32, #tpu.memory_space<vmem>>) attributes {dimension_semantics = [#tpu.dimension_semantics<parallel>, #tpu.dimension_semantics<arbitrary>], iteration_bounds = array<i64: 2, 1>, scalar_prefetch = 0 : i64, scratch_operands = 0 : i64, tpu.core_type = #tpu.core_type<tc>, window_params = [{transform_indices = @transform_0, window_bounds = array<i64: 1, 256, 32>}, {transform_indices = @transform_1, window_bounds = array<i64: 1, 128, 32>}, {transform_indices = @transform_2, window_bounds = array<i64: 1, 128, 32>}, {transform_indices = @transform_3, window_bounds = array<i64: 1, 256, 32>}, {transform_indices = @transform_4, window_bounds = array<i64: 1, 256, 128>}]} {
    %c0 = arith.constant 0 : index
    %c0_0 = arith.constant 0 : index
    %c0_1 = arith.constant 0 : index
    %0 = vector.load %arg2[%c0, %c0_0, %c0_1] : memref<1x256x32xf32, #tpu.memory_space<vmem>>, vector<1x256x32xf32>
    %1 = vector.shape_cast %0 : vector<1x256x32xf32> to vector<256x32xf32>
    %c0_2 = arith.constant 0 : index
    %c0_3 = arith.constant 0 : index
    %c0_4 = arith.constant 0 : index
    %2 = vector.load %arg3[%c0_2, %c0_3, %c0_4] : memref<1x128x32xf32, #tpu.memory_space<vmem>>, vector<1x128x32xf32>
    %3 = vector.shape_cast %2 : vector<1x128x32xf32> to vector<128x32xf32>
    %c0_5 = arith.constant 0 : index
    %c0_6 = arith.constant 0 : index
    %c0_7 = arith.constant 0 : index
    %4 = vector.load %arg4[%c0_5, %c0_6, %c0_7] : memref<1x128x32xf32, #tpu.memory_space<vmem>>, vector<1x128x32xf32>
    %5 = vector.shape_cast %4 : vector<1x128x32xf32> to vector<128x32xf32>
    %cst = arith.constant 0.176776692 : f32
    %6 = vector.broadcast %cst : f32 to vector<256x32xf32>
    %7 = arith.mulf %1, %6 : vector<256x32xf32>
    %cst_8 = arith.constant dense<0.000000e+00> : vector<256x128xf32>
    %8 = tpu.matmul %7, %3, %cst_8 {dimension_numbers = #tpu.dot_dimension_numbers<[1], [1], [0], [0], [0, 0, 1, 0], [], []>} : vector<256x32xf32>, vector<128x32xf32>, vector<256x128xf32> -> vector<256x128xf32>
    %cst_9 = arith.constant dense<0xFF800000> : vector<256xf32>
    %9 = vector.multi_reduction <maximumf>, %8, %cst_9 [1] : vector<256x128xf32> to vector<256xf32>
    %10 = vector.shape_cast %9 : vector<256xf32> to vector<256x1xf32>
    %11 = vector.broadcast %10 : vector<256x1xf32> to vector<256x128xf32>
    %12 = arith.subf %8, %11 : vector<256x128xf32>
    %13 = math.exp %12 : vector<256x128xf32>
    %cst_10 = arith.constant dense<0.000000e+00> : vector<256xf32>
    %14 = vector.multi_reduction <add>, %13, %cst_10 [1] : vector<256x128xf32> to vector<256xf32>
    %15 = vector.shape_cast %14 : vector<256xf32> to vector<256x1xf32>
    %16 = tpu.reciprocal %15 {approx = true} : vector<256x1xf32> -> vector<256x1xf32>
    %17 = arith.mulf %15, %16 : vector<256x1xf32>
    %cst_11 = arith.constant 2.000000e+00 : f32
    %18 = vector.broadcast %cst_11 : f32 to vector<256x1xf32>
    %19 = arith.subf %18, %17 : vector<256x1xf32>
    %20 = arith.mulf %16, %19 : vector<256x1xf32>
    %21 = vector.broadcast %20 : vector<256x1xf32> to vector<256x128xf32>
    %22 = arith.mulf %13, %21 : vector<256x128xf32>
    %cst_12 = arith.constant dense<0.000000e+00> : vector<256x32xf32>
    %23 = tpu.matmul %22, %5, %cst_12 {dimension_numbers = #tpu.dot_dimension_numbers<[1], [0], [0], [1], [0, 0, 1, 1], [], []>} : vector<256x128xf32>, vector<128x32xf32>, vector<256x32xf32> -> vector<256x32xf32>
    %c0_13 = arith.constant 0 : index
    %c0_14 = arith.constant 0 : index
    %c0_15 = arith.constant 0 : index
    %24 = vector.load %arg5[%c0_13, %c0_14, %c0_15] : memref<1x256x32xf32, #tpu.memory_space<vmem>>, vector<1x256x32xf32>
    %25 = vector.shape_cast %24 : vector<1x256x32xf32> to vector<256x32xf32>
    %26 = vector.shape_cast %23 : vector<256x32xf32> to vector<1x256x32xf32>
    tpu.vector_store %arg5[%c0_13, %c0_14, %c0_15], %26 {strides = array<i32>} : memref<1x256x32xf32, #tpu.memory_space<vmem>>, vector<1x256x32xf32>,
    %c0_16 = arith.constant 0 : index
    %c0_17 = arith.constant 0 : index
    %c0_18 = arith.constant 0 : index
    %27 = vector.load %arg6[%c0_16, %c0_17, %c0_18] : memref<1x256x128xf32, #tpu.memory_space<vmem>>, vector<1x256x128xf32>
    %28 = vector.shape_cast %27 : vector<1x256x128xf32> to vector<256x128xf32>
    %29 = vector.shape_cast %22 : vector<256x128xf32> to vector<1x256x128xf32>
    tpu.vector_store %arg6[%c0_16, %c0_17, %c0_18], %29 {strides = array<i32>} : memref<1x256x128xf32, #tpu.memory_space<vmem>>, vector<1x256x128xf32>,
    return
  }
  func.func @transform_0(%arg0: i32, %arg1: i32) -> (i32, i32, i32) {
    %c0_i32 = arith.constant 0 : i32
    %c0_i32_0 = arith.constant 0 : i32
    return %arg0, %arg1, %c0_i32 : i32, i32, i32
  }
  func.func @transform_1(%arg0: i32, %arg1: i32) -> (i32, i32, i32) {
    %c0_i32 = arith.constant 0 : i32
    %c0_i32_0 = arith.constant 0 : i32
    %c0_i32_1 = arith.constant 0 : i32
    return %arg0, %c0_i32, %c0_i32_0 : i32, i32, i32
  }
  func.func @transform_2(%arg0: i32, %arg1: i32) -> (i32, i32, i32) {
    %c0_i32 = arith.constant 0 : i32
    %c0_i32_0 = arith.constant 0 : i32
    %c0_i32_1 = arith.constant 0 : i32
    return %arg0, %c0_i32, %c0_i32_0 : i32, i32, i32
  }
  func.func @transform_3(%arg0: i32, %arg1: i32) -> (i32, i32, i32) {
    %c0_i32 = arith.constant 0 : i32
    %c0_i32_0 = arith.constant 0 : i32
    return %arg0, %arg1, %c0_i32 : i32, i32, i32
  }
  func.func @transform_4(%arg0: i32, %arg1: i32) -> (i32, i32, i32) {
    %c0_i32 = arith.constant 0 : i32
    %c0_i32_0 = arith.constant 0 : i32
    return %arg0, %arg1, %c0_i32 : i32, i32, i32
  }
}

</mosaic_0001>

<bundles_post_ra>
// kernel: tpu_custom_call.1
= control target key start
LH: loop header
LB: loop body
LE: loop exit
PB: predicated region body
PF: predicated region fallthrough
CT: control target
= control target key end

     0   :  { %10 = vsyncpa [#allocation3], 0  ;;  %s2435_s0 = inlined_call_operand.vmem [shape: f32[2,256,32], index: 0, kind: input, shape index: {}]   ;;  %s2436_s1 = inlined_call_operand.vmem [shape: f32[2,128,32], index: 1, kind: input, shape index: {}]   ;;  %s2437_s2 = inlined_call_operand.vmem [shape: f32[2,128,32], index: 2, kind: input, shape index: {}]   ;;  %s2438_s3 = inlined_call_operand.vmem [shape: f32[2,256,32], index: 3, kind: output, shape index: {0}]   ;;  %s2439_s4 = inlined_call_operand.hbm [shape: f32[2,256,128], index: 4, kind: output, shape index: {1}]  }
   0x1   :  { %12 = vsyncpa [#allocation3 + $0x1], 0  ;;  %s1805_s15 = smov 0   ;;  %s1807_s16 = smov 0  }
   0x2   :  { %s1809_s17 = smov 0   ;;  %s1811_s18 = smov 0  }
   0x3   :  { %s1813_s19 = smov 0   ;;  %s1815_s20 = smov 0  }
   0x4 LB: > { %s1377_s21 = sadd.s32 4294967295, %s1776_s20   ;;  %s1378_s22 = sadd.s32 4294967294, %s1776_s20   ;;  %s1776_s20 = sphi %s1815_s20, %s18_s20   ;;  %s1772_s19 = sphi %s1813_s19, %s2446_s19   ;;  %s1768_s18 = sphi %s1811_s18, %s2445_s18   ;;  %s1764_s17 = sphi %s1809_s17, %s2444_s17   ;;  %s1760_s16 = sphi %s1807_s16, %s2443_s16   ;;  %s1756_s15 = sphi %s1805_s15, %s2442_s15  }
   0x5   : > { %s30_s23 = sadd.s32 1, %s1772_s19  ;;  %s147_s24 = sadd.s32 1, %s1764_s17 }
   0x6   : > { %p32_p0 = scmp.ge.s32.totalorder %s30_s23, 2  ;;  %p157_p1 = scmp.ne.s32.totalorder %s1764_s17, %s1760_s16 }
   0x7   : > { %p158_p2 = scmp.eq.s32.totalorder %s1377_s21, 1  ;;  %p163_p3 = scmp.ne.s32.totalorder %s1760_s16, %s1756_s15 }
   0x8   : > { %s2448_s23 = smov (%p32_p0, %s30_s23), 0  ;;  %p164_p5 = scmp.eq.s32.totalorder %s1378_s22, 1 }
   0x9   : > { %p1845_p4 = por %p158_p2, %p157_p1  ;;  %s142_s26 = ssub.s32 %s1772_s19, %s2448_s23 }
   0xa   : > { %p1381_p6 = scmp.ge.s32.totalorder %s1776_s20, 1  ;;  %p145_p7 = scmp.eq.s32.totalorder %s142_s26, 0 }
   0xb   : > { %p1852_p8 = por %p164_p5, %p163_p3  ;;  %p211_p9 = scmp.lt.s32.totalorder %s1776_s20, 3 }
   0xc   : > { %s1858_s28 = scalar_select %p145_p7, %s1764_s17, %s147_s24  }
   0xd   : > { %p212_p10 = pnand %p1381_p6, %p211_p9 }
   0xe   : > { %p261_p11 = scmp.lt.s32.totalorder (!%p212_p10), %s1768_s18, 1  ;;  %s257_s21 = sand.u32 (!%p212_p10), 1, %s1760_s16  }
   0xf   : > { %215 = sbr.rel (%p212_p10) target bundleno = 846 (0x34e), region = 32  ;;  %s1382_s22 = sshll.u32 (!%p212_p10), %s257_s21, 8 }
  0x10   : > { %s2232_s24 = scalar_lea.vmem (!%p212_p10), [#allocation2], %s1382_s22  ;;  %s1718_s22 = scalar_lea.hbm (!%p212_p10), %s2439_s4, 512 }
  0x11   : > { %s1234_s9 = sshll.u32 (!%p212_p10), %s2232_s24, 4  ;;  %s1235_s9 = int_to_ptr.vmem [resolvable:$true] %s1234_s9 }
  0x14   : > { %s1862_s29 = scalar_select %p261_p11, %s1768_s18, 1  ;;  %vm387_vm0 = vcmask 261120  }
  0x16   : > { %s1445_s30 = sshll.u32 %s1862_s29, 7  ;;  %s1444_s8 = sshll.u32 %s1862_s29, 8 }
  0x17   : > { %s1870_s7 = scalar_lea.vmem %s2436_s1, %s1445_s30  ;;  %s1933_s11 = scalar_lea.vmem %s2435_s0, %s1444_s8 }
  0x18   : > { %v338_v0 = vld [vmem:[%s1870_s7 + $0x78] sm:$0xff]  ;;  %v337_v1 = vld [vmem:[%s1870_s7 + $0x70] sm:$0xff]  ;;  %v336_v2 = vld [vmem:[%s1870_s7 + $0x68] sm:$0xff]  ;;  %s2133_s14 = scalar_lea.vmem %s2437_s2, %s1445_s30  ;;  %s2316_s5 = scalar_lea.vmem %s2438_s3, %s1444_s8 }
  0x19   : > { %1391 = vmatpush.xpose.msk.msra.mxu0 %vm387_vm0, %v338_v0  ;;  %1449 = vmatpush.xpose.msk.msra.mxu2 %vm387_vm0, %v338_v0  ;;  %v335_v3 = vld [vmem:[%s1870_s7 + $0x60] sm:$0xff]  ;;  %v334_v4 = vld [vmem:[%s1870_s7 + $0x58] sm:$0xff]  ;;  %v333_v5 = vld [vmem:[%s1870_s7 + $0x50] sm:$0xff]  ;;  %s1448_s29 = sshll.u32 %s1768_s18, 8  ;;  %s1216_s18 = scalar_lea.sflag [#allocation3], %s257_s21 }
  0x1a   : > { %1450 = vmatpush.xpose.msk.msra.mxu3 %vm387_vm0, %v338_v0  ;;  %v332_v6 = vld [vmem:[%s1870_s7 + $0x48] sm:$0xff]  ;;  %v331_v7 = vld [vmem:[%s1870_s7 + $0x40] sm:$0xff]  ;;  %v330_v8 = vld [vmem:[%s1870_s7 + $0x38] sm:$0xff]  ;;  %s1233_s8 = scalar_lea.hbm %s2439_s4, %s1448_s29 }
  0x1b   : > { %v329_v9 = vld [vmem:[%s1870_s7 + $0x30] sm:$0xff]  ;;  %v328_v10 = vld [vmem:[%s1870_s7 + $0x28] sm:$0xff]  ;;  %v327_v11 = vld [vmem:[%s1870_s7 + $0x20] sm:$0xff]  ;;  %s1236_s10 = sshll.u32 %s1233_s8, 4  ;;  %s1237_s10 = int_to_ptr.hbm [resolvable:$true] %s1236_s10 }
  0x1c   : > { %v326_v12 = vld [vmem:[%s1870_s7 + $0x18] sm:$0xff]  ;;  %v325_v13 = vld [vmem:[%s1870_s7 + $0x10] sm:$0xff]  ;;  %v324_v14 = vld [vmem:[%s1870_s7 + $0x8] sm:$0xff] }
  0x1d   : > { %1392 = vmatpush.xpose.msk.msra.mxu0 %vm387_vm0, %v337_v1  ;;  %1451 = vmatpush.xpose.msk.msra.mxu2 %vm387_vm0, %v337_v1  ;;  %v291_v15 = vld [vmem:[%s1933_s11] sm:$0xff]  ;;  %v304_v16 = vld [vmem:[%s1933_s11 + $0x68] sm:$0xff]  ;;  %v305_v21 = vld [vmem:[%s1933_s11 + $0x70] sm:$0xff] }
  0x1e   : > { %1452 = vmatpush.xpose.msk.msra.mxu3 %vm387_vm0, %v337_v1  ;;  %v323_v17 = vld [vmem:[%s1870_s7] sm:$0xff]  ;;  %v355_v18 = vmul.f32 0.17677669, %v291_v15  ;;  %v368_v19 = vmul.f32 0.17677669, %v304_v16  ;;  %v292_v20 = vld [vmem:[%s1933_s11 + $0x8] sm:$0xff] }
  0x1f   : > { %v356_v22 = vmul.f32 0.17677669, %v292_v20  ;;  %v369_v23 = vmul.f32 0.17677669, %v305_v21  ;;  %v319_v24 = vld [vmem:[%s1933_s11 + $0xe0] sm:$0xff]  ;;  %v293_v26 = vld [vmem:[%s1933_s11 + $0x10] sm:$0xff] }
  0x20   : > { %v383_v25 = vmul.f32 0.17677669, %v319_v24  ;;  %v306_v27 = vld [vmem:[%s1933_s11 + $0x78] sm:$0xff]  ;;  %v357_v28 = vmul.f32 0.17677669, %v293_v26  ;;  %v307_v31 = vld [vmem:[%s1933_s11 + $0x80] sm:$0xff] }
  0x21   : > { %1393 = vmatpush.xpose.msk.msra.mxu0 %vm387_vm0, %v336_v2  ;;  %1453 = vmatpush.xpose.msk.msra.mxu2 %vm387_vm0, %v336_v2  ;;  %v370_v29 = vmul.f32 0.17677669, %v306_v27  ;;  %v294_v30 = vld [vmem:[%s1933_s11 + $0x18] sm:$0xff]  ;;  %v371_v33 = vmul.f32 0.17677669, %v307_v31  ;;  %v295_v34 = vld [vmem:[%s1933_s11 + $0x20] sm:$0xff] }
  0x22   : > { %1454 = vmatpush.xpose.msk.msra.mxu3 %vm387_vm0, %v336_v2  ;;  %v358_v32 = vmul.f32 0.17677669, %v294_v30  ;;  %v308_v35 = vld [vmem:[%s1933_s11 + $0x88] sm:$0xff]  ;;  %v359_v36 = vmul.f32 0.17677669, %v295_v34  ;;  %v309_v39 = vld [vmem:[%s1933_s11 + $0x90] sm:$0xff] }
  0x23   : > { %v372_v37 = vmul.f32 0.17677669, %v308_v35  ;;  %v296_v38 = vld [vmem:[%s1933_s11 + $0x28] sm:$0xff]  ;;  %v373_v41 = vmul.f32 0.17677669, %v309_v39  ;;  %v297_v42 = vld [vmem:[%s1933_s11 + $0x30] sm:$0xff] }
  0x24   : > { %v360_v40 = vmul.f32 0.17677669, %v296_v38  ;;  %v310_v43 = vld [vmem:[%s1933_s11 + $0x98] sm:$0xff]  ;;  %v361_v44 = vmul.f32 0.17677669, %v297_v42  ;;  %v311_v47 = vld [vmem:[%s1933_s11 + $0xa0] sm:$0xff] }
  0x25   : > { %1394 = vmatpush.xpose.msk.msra.mxu0 %vm387_vm0, %v335_v3  ;;  %1455 = vmatpush.xpose.msk.msra.mxu2 %vm387_vm0, %v335_v3  ;;  %v374_v45 = vmul.f32 0.17677669, %v310_v43  ;;  %v298_v46 = vld [vmem:[%s1933_s11 + $0x38] sm:$0xff]  ;;  %v375_v49 = vmul.f32 0.17677669, %v311_v47  ;;  %v299_v50 = vld [vmem:[%s1933_s11 + $0x40] sm:$0xff] }
  0x26   : > { %1456 = vmatpush.xpose.msk.msra.mxu3 %vm387_vm0, %v335_v3  ;;  %v362_v48 = vmul.f32 0.17677669, %v298_v46  ;;  %v312_v51 = vld [vmem:[%s1933_s11 + $0xa8] sm:$0xff]  ;;  %v363_v52 = vmul.f32 0.17677669, %v299_v50  ;;  %v313_v56 = vld [vmem:[%s1933_s11 + $0xb0] sm:$0xff] }
  0x27   : > { %v376_v53 = vmul.f32 0.17677669, %v312_v51  ;;  %v320_v54 = vld [vmem:[%s1933_s11 + $0xe8] sm:$0xff]  ;;  %v377_v59 = vmul.f32 0.17677669, %v313_v56  ;;  %v301_v60 = vld [vmem:[%s1933_s11 + $0x50] sm:$0xff] }
  0x28   : > { %v300_v55 = vld [vmem:[%s1933_s11 + $0x48] sm:$0xff]  ;;  %v384_v57 = vmul.f32 0.17677669, %v320_v54  ;;  %v314_v61 = vld [vmem:[%s1933_s11 + $0xb8] sm:$0xff]  ;;  %v365_v62 = vmul.f32 0.17677669, %v301_v60 }
  0x29   : > { %1395 = vmatpush.xpose.msk.msra.mxu0 %vm387_vm0, %v334_v4  ;;  %1457 = vmatpush.xpose.msk.msra.mxu2 %vm387_vm0, %v334_v4  ;;  %v364_v58 = vmul.f32 0.17677669, %v300_v55  ;;  %v378_v63 = vmul.f32 0.17677669, %v314_v61  ;;  %v302_v0 = vld [vmem:[%s1933_s11 + $0x58] sm:$0xff]  ;;  %v315_v1 = vld [vmem:[%s1933_s11 + $0xc0] sm:$0xff] }
  0x2a   : > { %1458 = vmatpush.xpose.msk.msra.mxu3 %vm387_vm0, %v334_v4  ;;  %v366_v2 = vmul.f32 0.17677669, %v302_v0  ;;  %v379_v3 = vmul.f32 0.17677669, %v315_v1  ;;  %v303_v4 = vld [vmem:[%s1933_s11 + $0x60] sm:$0xff]  ;;  %v321_v26 = vld [vmem:[%s1933_s11 + $0xf0] sm:$0xff] }
  0x2b   : > { %v385_v27 = vmul.f32 0.17677669, %v321_v26  ;;  %v322_v30 = vld [vmem:[%s1933_s11 + $0xf8] sm:$0xff] }
  0x2c   : > { %v386_v31 = vmul.f32 0.17677669, %v322_v30 }
  0x2d   : > { %1396 = vmatpush.xpose.msk.msra.mxu0 %vm387_vm0, %v333_v5  ;;  %1459 = vmatpush.xpose.msk.msra.mxu2 %vm387_vm0, %v333_v5 }
  0x2e   : > { %1460 = vmatpush.xpose.msk.msra.mxu3 %vm387_vm0, %v333_v5  ;;  %v316_v5 = vld [vmem:[%s1933_s11 + $0xc8] sm:$0xff] }
  0x31   : > { %1397 = vmatpush.xpose.msk.msra.mxu0 %vm387_vm0, %v332_v6  ;;  %1461 = vmatpush.xpose.msk.msra.mxu2 %vm387_vm0, %v332_v6 }
  0x32   : > { %1462 = vmatpush.xpose.msk.msra.mxu3 %vm387_vm0, %v332_v6  ;;  %v367_v6 = vmul.f32 0.17677669, %v303_v4 }
  0x35   : > { %1398 = vmatpush.xpose.msk.msra.mxu0 %vm387_vm0, %v331_v7  ;;  %1463 = vmatpush.xpose.msk.msra.mxu2 %vm387_vm0, %v331_v7 }
  0x36   : > { %1464 = vmatpush.xpose.msk.msra.mxu3 %vm387_vm0, %v331_v7  ;;  %v380_v7 = vmul.f32 0.17677669, %v316_v5 }
  0x39   : > { %1399 = vmatpush.xpose.msk.msra.mxu0 %vm387_vm0, %v330_v8  ;;  %1465 = vmatpush.xpose.msk.msra.mxu2 %vm387_vm0, %v330_v8 }
  0x3a   : > { %1466 = vmatpush.xpose.msk.msra.mxu3 %vm387_vm0, %v330_v8  ;;  %v317_v8 = vld [vmem:[%s1933_s11 + $0xd0] sm:$0xff] }
  0x3d   : > { %1400 = vmatpush.xpose.msk.msra.mxu0 %vm387_vm0, %v329_v9  ;;  %1467 = vmatpush.xpose.msk.msra.mxu2 %vm387_vm0, %v329_v9 }
  0x3e   : > { %1468 = vmatpush.xpose.msk.msra.mxu3 %vm387_vm0, %v329_v9  ;;  %v381_v9 = vmul.f32 0.17677669, %v317_v8 }
  0x41   : > { %1401 = vmatpush.xpose.msk.msra.mxu0 %vm387_vm0, %v328_v10  ;;  %1469 = vmatpush.xpose.msk.msra.mxu2 %vm387_vm0, %v328_v10 }
  0x42   : > { %1470 = vmatpush.xpose.msk.msra.mxu3 %vm387_vm0, %v328_v10  ;;  %v318_v10 = vld [vmem:[%s1933_s11 + $0xd8] sm:$0xff]  ;;  %s1712_s11 = sshra.s32 %s1237_s10, 4  ;;  %s1713_s11 = int_to_ptr.hbm [resolvable:$true] %s1712_s11 }
  0x43   : > { %s1714_s12 = scalar_lea.hbm %s1713_s11, 256  ;;  %p1719_p1 = scmp.lt.s32.totalorder %s1713_s11, %s2439_s4 }
  0x44   : > { %p1715_p12 = scmp.ne.s32.totalorder %s1713_s11, %s1714_s12  ;;  %p1720_p2 = scmp.lt.s32.totalorder %s1718_s22, %s1714_s12 }
  0x45   : > { %1402 = vmatpush.xpose.msk.msra.mxu0 %vm387_vm0, %v327_v11  ;;  %1471 = vmatpush.xpose.msk.msra.mxu2 %vm387_vm0, %v327_v11 }
  0x46   : > { %1472 = vmatpush.xpose.msk.msra.mxu3 %vm387_vm0, %v327_v11  ;;  %v382_v11 = vmul.f32 0.17677669, %v318_v10  ;;  %p1716_p13 = pnand %p1715_p12, %p1845_p4  ;;  %p1721_p3 = por %p1720_p2, %p1719_p1 }
  0x48   : > { %p1717_p0 = pneg %p1716_p13 }
  0x49   : > { %1403 = vmatpush.xpose.msk.msra.mxu0 %vm387_vm0, %v326_v12  ;;  %1473 = vmatpush.xpose.msk.msra.mxu2 %vm387_vm0, %v326_v12 }
  0x4a   : > { %1474 = vmatpush.xpose.msk.msra.mxu3 %vm387_vm0, %v326_v12  ;;  %p1722_p5 = pnand %p1721_p3, %p1717_p0 }
  0x4d   : > { %1404 = vmatpush.xpose.msk.msra.mxu0 %vm387_vm0, %v325_v13  ;;  %1475 = vmatpush.xpose.msk.msra.mxu2 %vm387_vm0, %v325_v13 }
  0x4e   : > { %1476 = vmatpush.xpose.msk.msra.mxu3 %vm387_vm0, %v325_v13 }
  0x51   : > { %1405 = vmatpush.xpose.msk.msra.mxu0 %vm387_vm0, %v324_v14  ;;  %1477 = vmatpush.xpose.msk.msra.mxu2 %vm387_vm0, %v324_v14 }
  0x52   : > { %1478 = vmatpush.xpose.msk.msra.mxu3 %vm387_vm0, %v324_v14 }
  0x55   : > { %1406 = vmatpush.xpose.msk.msra.mxu0 %vm387_vm0, %v323_v17  ;;  %1479 = vmatpush.xpose.msk.msra.mxu2 %vm387_vm0, %v323_v17 }
  0x56   : > { %1480 = vmatpush.xpose.msk.msra.mxu3 %vm387_vm0, %v323_v17 }
  0x58   : > { %1407 = vmatmul.msk.f32.vlgmr.msra.gmra.mxu0 %vm387_vm0, %v355_v18  ;;  %1420 = vmatmul.msk.f32.vlgmr.msra.gmra.mxu2 %vm387_vm0, %v368_v19 }
  0x59   : > { %1435 = vmatmul.msk.f32.vlgmr.msra.gmra.mxu3 %vm387_vm0, %v383_v25 }
  0x60   : > { %1408 = vmatmul.msk.f32.gmra.mxu0 %vm387_vm0, %v356_v22  ;;  %1421 = vmatmul.msk.f32.gmra.mxu2 %vm387_vm0, %v369_v23 }
  0x61   : > { %1436 = vmatmul.msk.f32.gmra.mxu3 %vm387_vm0, %v384_v57 }
  0x68   : > { %1409 = vmatmul.msk.f32.gmra.mxu0 %vm387_vm0, %v357_v28  ;;  %1422 = vmatmul.msk.f32.gmra.mxu2 %vm387_vm0, %v370_v29 }
  0x69   : > { %1437 = vmatmul.msk.f32.gmra.mxu3 %vm387_vm0, %v385_v27 }
  0x70   : > { %1410 = vmatmul.msk.f32.gmra.mxu0 %vm387_vm0, %v358_v32  ;;  %1423 = vmatmul.msk.f32.gmra.mxu2 %vm387_vm0, %v371_v33 }
  0x71   : > { %1438 = vmatmul.msk.f32.gmra.mxu3 %vm387_vm0, %v386_v31 }
  0x78   : > { %1411 = vmatmul.msk.f32.gmra.mxu0 %vm387_vm0, %v359_v36  ;;  %1424 = vmatmul.msk.f32.gmra.mxu2 %vm387_vm0, %v372_v37 }
  0x80   : > { %1412 = vmatmul.msk.f32.gmra.mxu0 %vm387_vm0, %v360_v40  ;;  %1425 = vmatmul.msk.f32.gmra.mxu2 %vm387_vm0, %v373_v41 }
  0x88   : > { %1413 = vmatmul.msk.f32.gmra.mxu0 %vm387_vm0, %v361_v44  ;;  %1426 = vmatmul.msk.f32.gmra.mxu2 %vm387_vm0, %v374_v45 }
  0x90   : > { %1414 = vmatmul.msk.f32.gmra.mxu0 %vm387_vm0, %v362_v48  ;;  %1427 = vmatmul.msk.f32.gmra.mxu2 %vm387_vm0, %v375_v49 }
  0x98   : > { %1415 = vmatmul.msk.f32.gmra.mxu0 %vm387_vm0, %v363_v52  ;;  %1428 = vmatmul.msk.f32.gmra.mxu2 %vm387_vm0, %v376_v53 }
  0xa0   : > { %1416 = vmatmul.msk.f32.gmra.mxu0 %vm387_vm0, %v364_v58  ;;  %1429 = vmatmul.msk.f32.gmra.mxu2 %vm387_vm0, %v377_v59 }
  0xa8   : > { %1417 = vmatmul.msk.f32.gmra.mxu0 %vm387_vm0, %v365_v62  ;;  %1430 = vmatmul.msk.f32.gmra.mxu2 %vm387_vm0, %v378_v63 }
  0xb0   : > { %1418 = vmatmul.msk.f32.gmra.mxu0 %vm387_vm0, %v366_v2  ;;  %1431 = vmatmul.msk.f32.gmra.mxu2 %vm387_vm0, %v379_v3 }
  0xb8   : > { %1419 = vmatmul.msk.f32.gmra.mxu0 %vm387_vm0, %v367_v6  ;;  %1432 = vmatmul.msk.f32.gmra.mxu2 %vm387_vm0, %v380_v7 }
  0xc0   : > { %1433 = vmatmul.msk.f32.gmra.mxu2 %vm387_vm0, %v381_v9 }
  0xc8   : > { %1434 = vmatmul.msk.f32.gmra.mxu2 %vm387_vm0, %v382_v11 }
  0xd5   : > { %v2004_v12 = vpop.f32.mrf.mxu0 }
  0xdb   : > { %v2006_v13 = vpop.f32.mrf.mxu2 }
  0xdc   : > { %671 = vmax.xlane.f32.xlu2 %v2006_v13  ;;  %v2027_v24 = vpop.f32.mrf.mxu3 }
  0xdd   : > { %v2009_v14 = vpop.f32.mrf.mxu0 }
  0xe3   : > { %v2011_v15 = vpop.f32.mrf.mxu2 }
  0xe4   : > { %v2077_v43 = vpop.f32.mrf.mxu3 }
  0xe5   : > { %v555_v16 = vpop.f32.mrf.mxu0 }
  0xe6   : > { %649 = vmax.xlane.f32.xlu0 %v555_v16 }
  0xeb   : > { %v2013_v17 = vpop.f32.mrf.mxu2 }
  0xed   : > { %v558_v18 = vpop.f32.mrf.mxu0 }
  0xee   : > { %651 = vmax.xlane.f32.xlu0 %v558_v18 }
  0xf3   : > { %v2015_v19 = vpop.f32.mrf.mxu2 }
  0xf5   : > { %v2017_v20 = vpop.f32.mrf.mxu0 }
  0xf6   : > { %653 = vmax.xlane.f32.xlu1 %v2017_v20 }
  0xfb   : > { %v2020_v21 = vpop.f32.mrf.mxu2 }
  0xfd   : > { %v2022_v22 = vpop.f32.mrf.mxu0 }
  0xfe   : > { %655 = vmax.xlane.f32.xlu1 %v2022_v22 }
 0x103   : > { %v2025_v23 = vpop.f32.mrf.mxu2 }
 0x105   : > { %v2029_v25 = vpop.f32.mrf.mxu0 }
 0x106   : > { %701 = vmax.xlane.f32.xlu1 %v2027_v24  ;;  %657 = vmax.xlane.f32.xlu2 %v2029_v25 }
 0x10b   : > { %v2035_v28 = vpop.f32.mrf.mxu2 }
 0x10d   : > { %v2037_v29 = vpop.f32.mrf.mxu0 }
 0x10e   : > { %679 = vmax.xlane.f32.xlu1 %v2020_v21  ;;  %659 = vmax.xlane.f32.xlu2 %v2037_v29 }
 0x113   : > { %v2043_v32 = vpop.f32.mrf.mxu2 }
 0x115   : > { %v2045_v33 = vpop.f32.mrf.mxu0 }
 0x116   : > { %673 = vmax.xlane.f32.xlu2 %v2011_v15  ;;  %661 = vmax.xlane.f32.xlu0 %v2045_v33 }
 0x11b   : > { %v2049_v34 = vpop.f32.mrf.mxu2 }
 0x11d   : > { %v2051_v35 = vpop.f32.mrf.mxu0 }
 0x11e   : > { %687 = vmax.xlane.f32.xlu0 %v2049_v34  ;;  %663 = vmax.xlane.f32.xlu2 %v2051_v35 }
 0x123   : > { %v2055_v36 = vpop.f32.mrf.mxu2 }
 0x125   : > { %v2057_v37 = vpop.f32.mrf.mxu0 }
 0x126   : > { %689 = vmax.xlane.f32.xlu0 %v2055_v36  ;;  %665 = vmax.xlane.f32.xlu2 %v2057_v37 }
 0x12b   : > { %v2061_v38 = vpop.f32.mrf.mxu2 }
 0x12d   : > { %v2063_v39 = vpop.f32.mrf.mxu0 }
 0x12e   : > { %691 = vmax.xlane.f32.xlu0 %v2061_v38  ;;  %667 = vmax.xlane.f32.xlu2 %v2063_v39 }
 0x133   : > { %v2067_v40 = vpop.f32.mrf.mxu2 }
 0x135   : > { %v2069_v41 = vpop.f32.mrf.mxu0 }
 0x136   : > { %693 = vmax.xlane.f32.xlu0 %v2067_v40  ;;  %669 = vmax.xlane.f32.xlu2 %v2069_v41 }
 0x13b   : > { %v2075_v42 = vpop.f32.mrf.mxu2 }
 0x13e   : > { %677 = vmax.xlane.f32.xlu0 %v2015_v19  ;;  %675 = vmax.xlane.f32.xlu2 %v2013_v17 }
 0x143   : > { %v2081_v44 = vpop.f32.mrf.mxu2 }
 0x146   : > { %695 = vmax.xlane.f32.xlu0 %v2075_v42  ;;  %703 = vmax.xlane.f32.xlu2 %v2077_v43 }
 0x14b   : > { %v2084_v45 = vpop.f32.mrf.mxu2 }
 0x14e   : > { %697 = vmax.xlane.f32.xlu0 %v2081_v44 }
 0x14f   : > { %v2094_v57 = vpop.xlane.xlu2 %671 }
 0x156   : > { %699 = vmax.xlane.f32.xlu0 %v2084_v45 }
 0x159   : > { %v650_v46 = vpop.xlane.xlu0 %649 }
 0x15a   : > { %v711_v47 = vsub.f32 %v555_v16, %v650_v46 }
 0x15c   : > { %v745_v48 = vmul.f32 1.442695, %v711_v47 }
 0x15e   : > { %1570 = vpow2.f32 %v745_v48 }
 0x161   : > { %v652_v49 = vpop.xlane.xlu0 %651 }
 0x162   : > { %v712_v50 = vsub.f32 %v558_v18, %v652_v49 }
 0x164   : > { %v2087_v51 = vpop.eup %1570  ;;  %v747_v52 = vmul.f32 1.442695, %v712_v50 }
 0x165   : > { %809 = vadd.xlane.f32.xlu1 %v2087_v51 }
 0x166   : > { %1572 = vpow2.f32 %v747_v52 }
 0x169   : > { %v654_v53 = vpop.xlane.xlu1 %653 }
 0x16a   : > { %v713_v54 = vsub.f32 %v2017_v20, %v654_v53 }
 0x16c   : > { %v2091_v55 = vpop.eup %1572  ;;  %v749_v56 = vmul.f32 1.442695, %v713_v54  ;;  %v2143_v54 = vpop.f32.mrf.mxu3 }
 0x16d   : > { %811 = vadd.xlane.f32.xlu1 %v2091_v55 }
 0x16e   : > { %1574 = vpow2.f32 %v749_v56 }
 0x171   : > { %v656_v58 = vpop.xlane.xlu1 %655 }
 0x172   : > { %v714_v59 = vsub.f32 %v2022_v22, %v656_v58 }
 0x174   : > { %v2097_v60 = vpop.eup %1574  ;;  %v751_v61 = vmul.f32 1.442695, %v714_v59  ;;  %v353_v59 = vld [vmem:[%s2133_s14 + $0x70] sm:$0xff] }
 0x175   : > { %813 = vadd.xlane.f32.xlu1 %v2097_v60 }
 0x176   : > { %1576 = vpow2.f32 %v751_v61 }
 0x179   : > { %v658_v62 = vpop.xlane.xlu2 %657 }
 0x17a   : > { %v715_v63 = vsub.f32 %v2029_v25, %v658_v62 }
 0x17c   : > { %v2101_v0 = vpop.eup %1576  ;;  %v753_v1 = vmul.f32 1.442695, %v715_v63  ;;  %v351_v63 = vld [vmem:[%s2133_s14 + $0x60] sm:$0xff] }
 0x17d   : > { %815 = vadd.xlane.f32.xlu1 %v2101_v0 }
 0x17e   : > { %1578 = vpow2.f32 %v753_v1 }
 0x181   : > { %v660_v2 = vpop.xlane.xlu2 %659 }
 0x182   : > { %v716_v3 = vsub.f32 %v2037_v29, %v660_v2  ;;  %v350_v2 = vld [vmem:[%s2133_s14 + $0x58] sm:$0xff] }
 0x184   : > { %v755_v4 = vmul.f32 1.442695, %v716_v3  ;;  %v2105_v5 = vpop.eup %1578 }
 0x185   : > { %817 = vadd.xlane.f32.xlu1 %v2105_v5 }
 0x186   : > { %1580 = vpow2.f32 %v755_v4  ;;  %v349_v4 = vld [vmem:[%s2133_s14 + $0x50] sm:$0xff] }
 0x189   : > { %v2108_v6 = vpop.xlane.xlu2 %673  ;;  %v662_v7 = vpop.xlane.xlu0 %661 }
 0x18a   : > { %v717_v8 = vsub.f32 %v2045_v33, %v662_v7 }
 0x18c   : > { %v757_v9 = vmul.f32 1.442695, %v717_v8  ;;  %v2111_v10 = vpop.eup %1580  ;;  %v2159_v8 = vpop.f32.mrf.mxu3 }
 0x18d   : > { %819 = vadd.xlane.f32.xlu1 %v2111_v10 }
 0x18e   : > { %1582 = vpow2.f32 %v757_v9  ;;  %v348_v9 = vld [vmem:[%s2133_s14 + $0x48] sm:$0xff] }
 0x191   : > { %v688_v11 = vpop.xlane.xlu0 %687  ;;  %v664_v16 = vpop.xlane.xlu2 %663 }
 0x192   : > { %v730_v18 = vsub.f32 %v2049_v34, %v688_v11  ;;  %v718_v20 = vsub.f32 %v2051_v35, %v664_v16  ;;  %v722_v11 = vsub.f32 %v2006_v13, %v2094_v57  ;;  %v347_v16 = vld [vmem:[%s2133_s14 + $0x40] sm:$0xff]  ;;  %v345_v57 = vld [vmem:[%s2133_s14 + $0x30] sm:$0xff] }
 0x194   : > { %v783_v22 = vmul.f32 1.442695, %v730_v18  ;;  %v759_v25 = vmul.f32 1.442695, %v718_v20  ;;  %v2116_v26 = vpop.eup %1582  ;;  %v767_v18 = vmul.f32 1.442695, %v722_v11 }
 0x195   : > { %821 = vadd.xlane.f32.xlu1 %v2116_v26 }
 0x196   : > { %1584 = vpow2.f32 %v783_v22  ;;  %v346_v22 = vld [vmem:[%s2133_s14 + $0x38] sm:$0xff] }
 0x197   : > { %1586 = vpow2.f32 %v759_v25 }
 0x199   : > { %v690_v27 = vpop.xlane.xlu0 %689  ;;  %v666_v29 = vpop.xlane.xlu2 %665 }
 0x19a   : > { %v731_v30 = vsub.f32 %v2055_v36, %v690_v27  ;;  %v719_v31 = vsub.f32 %v2057_v37, %v666_v29 }
 0x19c   : > { %v2121_v33 = vpop.eup %1584  ;;  %v785_v34 = vmul.f32 1.442695, %v731_v30  ;;  %v761_v46 = vmul.f32 1.442695, %v719_v31  ;;  %v723_v30 = vsub.f32 %v2011_v15, %v2108_v6  ;;  %v343_v31 = vld [vmem:[%s2133_s14 + $0x20] sm:$0xff] }
 0x19d   : > { %v2123_v35 = vpop.eup %1586  ;;  %847 = vadd.xlane.f32.xlu2 %v2121_v33 }
 0x19e   : > { %1588 = vpow2.f32 %v785_v34  ;;  %823 = vadd.xlane.f32.xlu1 %v2123_v35  ;;  %v702_v34 = vpop.xlane.xlu1 %701 }
 0x19f   : > { %1590 = vpow2.f32 %v761_v46  ;;  %v769_v46 = vmul.f32 1.442695, %v723_v30 }
 0x1a1   : > { %v692_v47 = vpop.xlane.xlu0 %691  ;;  %v668_v48 = vpop.xlane.xlu2 %667 }
 0x1a2   : > { %v732_v49 = vsub.f32 %v2061_v38, %v692_v47  ;;  %v720_v52 = vsub.f32 %v2063_v39, %v668_v48  ;;  %v354_v38 = vld [vmem:[%s2133_s14 + $0x78] sm:$0xff]  ;;  %v352_v39 = vld [vmem:[%s2133_s14 + $0x68] sm:$0xff] }
 0x1a3   : > { %1481 = vmatpush.msra.mxu1 %v354_v38  ;;  %1482 = vmatpush.msrb.mxu3 %v354_v38  ;;  %v342_v48 = vld [vmem:[%s2133_s14 + $0x18] sm:$0xff] }
 0x1a4   : > { %v2135_v36 = vpop.eup %1588  ;;  %v787_v37 = vmul.f32 1.442695, %v732_v49  ;;  %1029 = vmatpush.msrb.mxu0 %v354_v38  ;;  %v763_v56 = vmul.f32 1.442695, %v720_v52 }
 0x1a5   : > { %v2137_v50 = vpop.eup %1590  ;;  %849 = vadd.xlane.f32.xlu0 %v2135_v36  ;;  %1483 = vmatpush.msra.mxu1 %v353_v59 }
 0x1a6   : > { %1592 = vpow2.f32 %v787_v37  ;;  %825 = vadd.xlane.f32.xlu2 %v2137_v50  ;;  %1484 = vmatpush.msrb.mxu3 %v353_v59  ;;  %v341_v37 = vld [vmem:[%s2133_s14 + $0x10] sm:$0xff] }
 0x1a7   : > { %1594 = vpow2.f32 %v763_v56  ;;  %1485 = vmatpush.msra.mxu1 %v352_v39  ;;  %1030 = vmatpush.msrb.mxu0 %v353_v59  ;;  %v340_v56 = vld [vmem:[%s2133_s14 + $0x8] sm:$0xff] }
 0x1a8   : > { %1486 = vmatpush.msrb.mxu3 %v352_v39 }
 0x1a9   : > { %v694_v53 = vpop.xlane.xlu0 %693  ;;  %v670_v58 = vpop.xlane.xlu2 %669  ;;  %1487 = vmatpush.msra.mxu1 %v351_v63  ;;  %1031 = vmatpush.msrb.mxu0 %v352_v39 }
 0x1aa   : > { %v721_v62 = vsub.f32 %v2069_v41, %v670_v58  ;;  %v733_v1 = vsub.f32 %v2067_v40, %v694_v53  ;;  %1488 = vmatpush.msrb.mxu3 %v351_v63  ;;  %v339_v58 = vld [vmem:[%s2133_s14] sm:$0xff] }
 0x1ab   : > { %1489 = vmatpush.msra.mxu1 %v350_v2  ;;  %1032 = vmatpush.msrb.mxu0 %v351_v63  ;;  %v680_v63 = vpop.xlane.xlu1 %679 }
 0x1ac   : > { %v2146_v61 = vpop.eup %1592  ;;  %v765_v7 = vmul.f32 1.442695, %v721_v62  ;;  %v789_v41 = vmul.f32 1.442695, %v733_v1  ;;  %1490 = vmatpush.msrb.mxu3 %v350_v2 }
 0x1ad   : > { %705 = vmax.xlane.f32.xlu0 %v2143_v54  ;;  %851 = vadd.xlane.f32.xlu1 %v2146_v61  ;;  %v2162_v40 = vpop.eup %1594 }
 0x1ae   : > { %681 = vmax.xlane.f32.xlu2 %v2025_v23  ;;  %1491 = vmatpush.msra.mxu1 %v349_v4  ;;  %1596 = vpow2.f32 %v765_v7  ;;  %v726_v7 = vsub.f32 %v2020_v21, %v680_v63 }
 0x1af   : > { %1598 = vpow2.f32 %v789_v41  ;;  %1492 = vmatpush.msrb.mxu3 %v349_v4  ;;  %1033 = vmatpush.msrb.mxu0 %v350_v2 }
 0x1b0   : > { %1493 = vmatpush.msra.mxu1 %v348_v9  ;;  %1600 = vpow2.f32 %v767_v18 }
 0x1b1   : > { %v2156_v3 = vpop.xlane.xlu0 %677  ;;  %1494 = vmatpush.msrb.mxu3 %v348_v9  ;;  %1034 = vmatpush.msrb.mxu0 %v349_v4  ;;  %v676_v15 = vpop.xlane.xlu2 %675 }
 0x1b2   : > { %1495 = vmatpush.msra.mxu1 %v347_v16  ;;  %v724_v53 = vsub.f32 %v2013_v17, %v676_v15 }
 0x1b3   : > { %1496 = vmatpush.msrb.mxu3 %v347_v16  ;;  %1035 = vmatpush.msrb.mxu0 %v348_v9  ;;  %v775_v9 = vmul.f32 1.442695, %v726_v7 }
 0x1b4   : > { %1497 = vmatpush.msra.mxu1 %v346_v22  ;;  %v2173_v25 = vpop.eup %1596  ;;  %v771_v59 = vmul.f32 1.442695, %v724_v53 }
 0x1b5   : > { %683 = vmax.xlane.f32.xlu1 %v2035_v28  ;;  %827 = vadd.xlane.f32.xlu0 %v2162_v40  ;;  %v2175_v29 = vpop.eup %1598 }
 0x1b6   : > { %707 = vmax.xlane.f32.xlu2 %v2159_v8  ;;  %1499 = vmatpush.msra.mxu1 %v345_v57  ;;  %v2186_v49 = vpop.eup %1600 }
 0x1b7   : > { %1498 = vmatpush.msrb.mxu3 %v346_v22  ;;  %1036 = vmatpush.msrb.mxu0 %v347_v16 }
 0x1b9   : > { %v696_v20 = vpop.xlane.xlu0 %695  ;;  %1500 = vmatpush.msrb.mxu3 %v345_v57  ;;  %1037 = vmatpush.msrb.mxu0 %v346_v22  ;;  %v704_v4 = vpop.xlane.xlu2 %703 }
 0x1ba   : > { %v734_v13 = vsub.f32 %v2075_v42, %v696_v20  ;;  %v344_v42 = vld [vmem:[%s2133_s14 + $0x28] sm:$0xff] }
 0x1bb   : > { %1501 = vmatpush.msra.mxu1 %v344_v42  ;;  %1502 = vmatpush.msrb.mxu3 %v344_v42 }
 0x1bc   : > { %v791_v27 = vmul.f32 1.442695, %v734_v13  ;;  %1038 = vmatpush.msrb.mxu0 %v345_v57 }
 0x1bd   : > { %645 = vmax.xlane.f32.xlu0 %v2004_v12  ;;  %829 = vadd.xlane.f32.xlu1 %v2173_v25 }
 0x1be   : > { %1602 = vpow2.f32 %v791_v27  ;;  %853 = vadd.xlane.f32.xlu2 %v2175_v29  ;;  %1503 = vmatpush.msra.mxu1 %v343_v31 }
 0x1bf   : > { %1604 = vpow2.f32 %v769_v46  ;;  %1504 = vmatpush.msrb.mxu3 %v343_v31  ;;  %1039 = vmatpush.msrb.mxu0 %v344_v42 }
 0x1c0   : > { %1505 = vmatpush.msra.mxu1 %v342_v48 }
 0x1c1   : > { %v698_v47 = vpop.xlane.xlu0 %697  ;;  %1506 = vmatpush.msrb.mxu3 %v342_v48  ;;  %1040 = vmatpush.msrb.mxu0 %v343_v31 }
 0x1c2   : > { %v735_v6 = vsub.f32 %v2081_v44, %v698_v47  ;;  %1507 = vmatpush.msra.mxu1 %v341_v37  ;;  %v725_v44 = vsub.f32 %v2015_v19, %v2156_v3  ;;  %v737_v3 = vsub.f32 %v2027_v24, %v702_v34 }
 0x1c3   : > { %1508 = vmatpush.msrb.mxu3 %v341_v37  ;;  %1041 = vmatpush.msrb.mxu0 %v342_v48 }
 0x1c4   : > { %v2189_v52 = vpop.eup %1602  ;;  %v793_v38 = vmul.f32 1.442695, %v735_v6  ;;  %1509 = vmatpush.msra.mxu1 %v340_v56  ;;  %v773_v1 = vmul.f32 1.442695, %v725_v44  ;;  %v797_v41 = vmul.f32 1.442695, %v737_v3 }
 0x1c5   : > { %831 = vadd.xlane.f32.xlu0 %v2186_v49  ;;  %855 = vadd.xlane.f32.xlu1 %v2189_v52  ;;  %v2200_v62 = vpop.eup %1604 }
 0x1c6   : > { %1606 = vpow2.f32 %v793_v38  ;;  %647 = vmax.xlane.f32.xlu2 %v2009_v14  ;;  %1511 = vmatpush.msra.mxu1 %v339_v58 }
 0x1c7   : > { %1608 = vpow2.f32 %v771_v59  ;;  %1510 = vmatpush.msrb.mxu3 %v340_v56  ;;  %1042 = vmatpush.msrb.mxu0 %v341_v37 }
 0x1c9   : > { %v700_v39 = vpop.xlane.xlu0 %699  ;;  %1512 = vmatpush.msrb.mxu3 %v339_v58  ;;  %1043 = vmatpush.msrb.mxu0 %v340_v56 }
 0x1ca   : > { %v736_v17 = vsub.f32 %v2084_v45, %v700_v39  ;;  %v738_v45 = vsub.f32 %v2077_v43, %v704_v4 }
 0x1cb   : > { %1044 = vmatpush.msrb.mxu0 %v339_v58 }
 0x1cc   : > { %v2202_v2 = vpop.eup %1606  ;;  %v795_v19 = vmul.f32 1.442695, %v736_v17  ;;  %v799_v11 = vmul.f32 1.442695, %v738_v45 }
 0x1cd   : > { %685 = vmax.xlane.f32.xlu0 %v2043_v32  ;;  %833 = vadd.xlane.f32.xlu1 %v2200_v62  ;;  %v2210_v24 = vpop.eup %1608 }
 0x1ce   : > { %1610 = vpow2.f32 %v795_v19  ;;  %857 = vadd.xlane.f32.xlu2 %v2202_v2 }
 0x1cf   : > { %1612 = vpow2.f32 %v773_v1 }
 0x1d0   : > { %1614 = vpow2.f32 %v797_v41 }
 0x1d1   : > { %1616 = vpow2.f32 %v775_v9 }
 0x1d2   : > { %1618 = vpow2.f32 %v799_v11 }
 0x1d4   : > { %v2212_v16 = vpop.eup %1610 }
 0x1d5   : > { %v2214_v18 = vpop.eup %1612  ;;  %859 = vadd.xlane.f32.xlu1 %v2212_v16  ;;  %835 = vadd.xlane.f32.xlu0 %v2210_v24 }
 0x1d6   : > { %837 = vadd.xlane.f32.xlu2 %v2214_v18  ;;  %v2219_v43 = vpop.eup %1614 }
 0x1d7   : > { %v2221_v20 = vpop.eup %1616 }
 0x1d8   : > { %v810_v21 = vpop.xlane.xlu1 %809  ;;  %v2223_v22 = vpop.eup %1618 }
 0x1d9   : > { %1620 = vrcp.f32 %v810_v21 }
 0x1dd   : > { %839 = vadd.xlane.f32.xlu1 %v2221_v20  ;;  %861 = vadd.xlane.f32.xlu0 %v2219_v43 }
 0x1de   : > { %863 = vadd.xlane.f32.xlu2 %v2223_v22 }
 0x1df   : > { %v1621_v13 = vpop.eup %1620 }
 0x1e0   : > { %v903_v57 = vmul.f32 %v1621_v13, %v810_v21  ;;  %v812_v27 = vpop.xlane.xlu1 %811 }
 0x1e1   : > { %1622 = vrcp.f32 %v812_v27 }
 0x1e2   : > { %v935_v30 = vsub.f32 2.0, %v903_v57 }
 0x1e4   : > { %v967_v42 = vmul.f32 %v1621_v13, %v935_v30 }
 0x1e6   : > { %v999_v31 = vmul.f32 %v2087_v51, %v967_v42 }
 0x1e7   : > { %v1623_v34 = vpop.eup %1622 }
 0x1e8   : > { %v904_v46 = vmul.f32 %v1623_v34, %v812_v27  ;;  %1051 = vmatmul.f32.vlgmr.msra.gmra.mxu1 %v999_v31  ;;  %1176 = vst [vmem:[%s2232_s24 + $0x10] sm:$0xff] %v999_v31  ;;  %v814_v47 = vpop.xlane.xlu1 %813 }
 0x1e9   : > { %1624 = vrcp.f32 %v814_v47 }
 0x1ea   : > { %v936_v48 = vsub.f32 2.0, %v904_v46 }
 0x1ec   : > { %v968_v15 = vmul.f32 %v1623_v34, %v936_v48 }
 0x1ee   : > { %v1000_v6 = vmul.f32 %v2091_v55, %v968_v15 }
 0x1ef   : > { %v1625_v37 = vpop.eup %1624 }
 0x1f0   : > { %v905_v38 = vmul.f32 %v1625_v37, %v814_v47  ;;  %1054 = vmatmul.f32.gmra.mxu1 %v1000_v6  ;;  %1177 = vst [vmem:[%s2232_s24 + $0x18] sm:$0xff] %v1000_v6  ;;  %v816_v51 = vpop.xlane.xlu1 %815 }
 0x1f1   : > { %1626 = vrcp.f32 %v816_v51 }
 0x1f2   : > { %v937_v53 = vsub.f32 2.0, %v905_v38 }
 0x1f4   : > { %v969_v56 = vmul.f32 %v1625_v37, %v937_v53 }
 0x1f6   : > { %v1001_v44 = vmul.f32 %v2097_v60, %v969_v56 }
 0x1f7   : > { %v1627_v58 = vpop.eup %1626 }
 0x1f8   : > { %v906_v59 = vmul.f32 %v1627_v58, %v816_v51  ;;  %1057 = vmatmul.f32.gmra.mxu1 %v1001_v44  ;;  %1178 = vst [vmem:[%s2232_s24 + $0x20] sm:$0xff] %v1001_v44  ;;  %v818_v39 = vpop.xlane.xlu1 %817 }
 0x1f9   : > { %1628 = vrcp.f32 %v818_v39 }
 0x1fa   : > { %v938_v17 = vsub.f32 2.0, %v906_v59 }
 0x1fc   : > { %v970_v55 = vmul.f32 %v1627_v58, %v938_v17 }
 0x1fe   : > { %v1002_v63 = vmul.f32 %v2101_v0, %v970_v55 }
 0x1ff   : > { %v1629_v1 = vpop.eup %1628 }
 0x200   : > { %1060 = vmatmul.f32.gmra.mxu1 %v1002_v63  ;;  %1179 = vst [vmem:[%s2232_s24 + $0x28] sm:$0xff] %v1002_v63  ;;  %v907_v4 = vmul.f32 %v1629_v1, %v818_v39  ;;  %v820_v19 = vpop.xlane.xlu1 %819 }
 0x201   : > { %1630 = vrcp.f32 %v820_v19 }
 0x202   : > { %v939_v3 = vsub.f32 2.0, %v907_v4 }
 0x204   : > { %v971_v60 = vmul.f32 %v1629_v1, %v939_v3 }
 0x206   : > { %v1003_v7 = vmul.f32 %v2105_v5, %v971_v60 }
 0x207   : > { %v1631_v45 = vpop.eup %1630 }
 0x208   : > { %v908_v41 = vmul.f32 %v1631_v45, %v820_v19  ;;  %1063 = vmatmul.f32.gmra.mxu1 %v1003_v7  ;;  %1180 = vst [vmem:[%s2232_s24 + $0x30] sm:$0xff] %v1003_v7  ;;  %v822_v9 = vpop.xlane.xlu1 %821 }
 0x209   : > { %1632 = vrcp.f32 %v822_v9 }
 0x20a   : > { %v940_v11 = vsub.f32 2.0, %v908_v41 }
 0x20c   : > { %v972_v21 = vmul.f32 %v1631_v45, %v940_v11 }
 0x20e   : > { %v1004_v0 = vmul.f32 %v2111_v10, %v972_v21 }
 0x20f   : > { %v1633_v13 = vpop.eup %1632 }
 0x210   : > { %v848_v57 = vpop.xlane.xlu2 %847  ;;  %v909_v27 = vmul.f32 %v1633_v13, %v822_v9  ;;  %1066 = vmatmul.f32.gmra.mxu1 %v1004_v0  ;;  %1181 = vst [vmem:[%s2232_s24 + $0x38] sm:$0xff] %v1004_v0 }
 0x211   : > { %v824_v30 = vpop.xlane.xlu1 %823  ;;  %1634 = vrcp.f32 %v848_v57 }
 0x212   : > { %1636 = vrcp.f32 %v824_v30  ;;  %v941_v5 = vsub.f32 2.0, %v909_v27 }
 0x214   : > { %v973_v42 = vmul.f32 %v1633_v13, %v941_v5 }
 0x216   : > { %v1005_v34 = vmul.f32 %v2116_v26, %v973_v42 }
 0x217   : > { %v1635_v31 = vpop.eup %1634 }
 0x218   : > { %v1637_v46 = vpop.eup %1636  ;;  %v922_v47 = vmul.f32 %v1635_v31, %v848_v57  ;;  %v850_v48 = vpop.xlane.xlu0 %849  ;;  %1069 = vmatmul.f32.gmra.mxu1 %v1005_v34  ;;  %1182 = vst [vmem:[%s2232_s24 + $0x40] sm:$0xff] %v1005_v34 }
 0x219   : > { %v910_v15 = vmul.f32 %v1637_v46, %v824_v30  ;;  %1638 = vrcp.f32 %v850_v48  ;;  %v826_v10 = vpop.xlane.xlu2 %825 }
 0x21a   : > { %v954_v6 = vsub.f32 2.0, %v922_v47  ;;  %1640 = vrcp.f32 %v826_v10 }
 0x21b   : > { %v942_v37 = vsub.f32 2.0, %v910_v15 }
 0x21c   : > { %v986_v38 = vmul.f32 %v1635_v31, %v954_v6 }
 0x21d   : > { %v974_v51 = vmul.f32 %v1637_v46, %v942_v37 }
 0x21e   : > { %v1018_v53 = vmul.f32 %v2121_v33, %v986_v38 }
 0x21f   : > { %v1639_v56 = vpop.eup %1638  ;;  %v1006_v26 = vmul.f32 %v2123_v35, %v974_v51 }
 0x220   : > { %v1641_v44 = vpop.eup %1640  ;;  %v923_v58 = vmul.f32 %v1639_v56, %v850_v48  ;;  %v706_v59 = vpop.xlane.xlu0 %705  ;;  %1108 = vmatmul.f32.vlgmr.msrb.gmra.mxu3 %v1018_v53  ;;  %1195 = vst [vmem:[%s2232_s24 + $0xa8] sm:$0xff] %v1018_v53 }
 0x221   : > { %v852_v39 = vpop.xlane.xlu1 %851  ;;  %v911_v17 = vmul.f32 %v1641_v44, %v826_v10  ;;  %v739_v55 = vsub.f32 %v2143_v54, %v706_v59  ;;  %1072 = vmatmul.f32.gmra.mxu1 %v1006_v26  ;;  %1183 = vst [vmem:[%s2232_s24 + $0x48] sm:$0xff] %v1006_v26  ;;  %v682_v63 = vpop.xlane.xlu2 %681 }
 0x222   : > { %1642 = vrcp.f32 %v852_v39  ;;  %v955_v1 = vsub.f32 2.0, %v923_v58  ;;  %v727_v33 = vsub.f32 %v2025_v23, %v682_v63 }
 0x223   : > { %v943_v4 = vsub.f32 2.0, %v911_v17  ;;  %v801_v19 = vmul.f32 1.442695, %v739_v55 }
 0x224   : > { %v777_v35 = vmul.f32 1.442695, %v727_v33  ;;  %v987_v3 = vmul.f32 %v1639_v56, %v955_v1 }
 0x225   : > { %1644 = vpow2.f32 %v801_v19  ;;  %v975_v60 = vmul.f32 %v1641_v44, %v943_v4 }
 0x226   : > { %1646 = vpow2.f32 %v777_v35  ;;  %v1019_v7 = vmul.f32 %v2135_v36, %v987_v3 }
 0x227   : > { %v1007_v54 = vmul.f32 %v2137_v50, %v975_v60 }
 0x228   : > { %v1643_v45 = vpop.eup %1642  ;;  %v828_v11 = vpop.xlane.xlu0 %827  ;;  %1111 = vmatmul.f32.gmra.mxu3 %v1019_v7  ;;  %1196 = vst [vmem:[%s2232_s24 + $0xb0] sm:$0xff] %v1019_v7 }
 0x229   : > { %v924_v41 = vmul.f32 %v1643_v45, %v852_v39  ;;  %v684_v9 = vpop.xlane.xlu1 %683  ;;  %1648 = vrcp.f32 %v828_v11  ;;  %1075 = vmatmul.f32.gmra.mxu1 %v1007_v54  ;;  %1184 = vst [vmem:[%s2232_s24 + $0x50] sm:$0xff] %v1007_v54  ;;  %v708_v21 = vpop.xlane.xlu2 %707 }
 0x22a   : > { %v728_v23 = vsub.f32 %v2035_v28, %v684_v9  ;;  %v740_v13 = vsub.f32 %v2159_v8, %v708_v21 }
 0x22b   : > { %v956_v0 = vsub.f32 2.0, %v924_v41  ;;  %v2259_v57 = vpop.eup %1644 }
 0x22c   : > { %v779_v36 = vmul.f32 1.442695, %v728_v23  ;;  %v2261_v27 = vpop.eup %1646  ;;  %v803_v50 = vmul.f32 1.442695, %v740_v13  ;;  %865 = vadd.xlane.f32.xlu1 %v2259_v57 }
 0x22d   : > { %v988_v30 = vmul.f32 %v1643_v45, %v956_v0  ;;  %841 = vadd.xlane.f32.xlu0 %v2261_v27 }
 0x22e   : > { %1650 = vpow2.f32 %v779_v36 }
 0x22f   : > { %1652 = vpow2.f32 %v803_v50  ;;  %v1020_v28 = vmul.f32 %v2146_v61, %v988_v30  ;;  %v1649_v5 = vpop.eup %1648 }
 0x230   : > { %v912_v42 = vmul.f32 %v1649_v5, %v828_v11  ;;  %v646_v31 = vpop.xlane.xlu0 %645 }
 0x231   : > { %v830_v8 = vpop.xlane.xlu1 %829  ;;  %1114 = vmatmul.f32.gmra.mxu3 %v1020_v28  ;;  %1197 = vst [vmem:[%s2232_s24 + $0xb8] sm:$0xff] %v1020_v28  ;;  %v709_v34 = vsub.f32 %v2004_v12, %v646_v31  ;;  %v854_v46 = vpop.xlane.xlu2 %853 }
 0x232   : > { %1654 = vrcp.f32 %v830_v8  ;;  %v944_v47 = vsub.f32 2.0, %v912_v42 }
 0x233   : > { %1656 = vrcp.f32 %v854_v46  ;;  %v741_v15 = vmul.f32 1.442695, %v709_v34 }
 0x234   : > { %v2268_v48 = vpop.eup %1650  ;;  %v976_v6 = vmul.f32 %v1649_v5, %v944_v47 }
 0x235   : > { %v2270_v10 = vpop.eup %1652  ;;  %1658 = vpow2.f32 %v741_v15  ;;  %843 = vadd.xlane.f32.xlu0 %v2268_v48 }
 0x236   : > { %867 = vadd.xlane.f32.xlu1 %v2270_v10  ;;  %v1008_v61 = vmul.f32 %v2162_v40, %v976_v6 }
 0x238   : > { %v1655_v37 = vpop.eup %1654  ;;  %v832_v51 = vpop.xlane.xlu0 %831  ;;  %1078 = vmatmul.f32.gmra.mxu1 %v1008_v61  ;;  %1185 = vst [vmem:[%s2232_s24 + $0x58] sm:$0xff] %v1008_v61 }
 0x239   : > { %v1657_v12 = vpop.eup %1656  ;;  %v913_v38 = vmul.f32 %v1655_v37, %v830_v8  ;;  %v856_v53 = vpop.xlane.xlu1 %855  ;;  %1660 = vrcp.f32 %v832_v51 }
 0x23a   : > { %v925_v56 = vmul.f32 %v1657_v12, %v854_v46  ;;  %v648_v26 = vpop.xlane.xlu2 %647  ;;  %1662 = vrcp.f32 %v856_v53 }
 0x23b   : > { %v945_v44 = vsub.f32 2.0, %v913_v38  ;;  %v710_v58 = vsub.f32 %v2009_v14, %v648_v26  ;;  %v2277_v59 = vpop.eup %1658 }
 0x23c   : > { %v957_v39 = vsub.f32 2.0, %v925_v56  ;;  %805 = vadd.xlane.f32.xlu2 %v2277_v59 }
 0x23d   : > { %v743_v17 = vmul.f32 1.442695, %v710_v58  ;;  %v977_v40 = vmul.f32 %v1655_v37, %v945_v44 }
 0x23e   : > { %v989_v55 = vmul.f32 %v1657_v12, %v957_v39 }
 0x23f   : > { %1664 = vpow2.f32 %v743_v17  ;;  %v1009_v63 = vmul.f32 %v2173_v25, %v977_v40  ;;  %v1661_v1 = vpop.eup %1660 }
 0x240   : > { %v1021_v33 = vmul.f32 %v2175_v29, %v989_v55  ;;  %v1663_v4 = vpop.eup %1662  ;;  %v914_v19 = vmul.f32 %v1661_v1, %v832_v51  ;;  %v686_v35 = vpop.xlane.xlu0 %685 }
 0x241   : > { %v834_v14 = vpop.xlane.xlu1 %833  ;;  %1081 = vmatmul.f32.gmra.mxu1 %v1009_v63  ;;  %1186 = vst [vmem:[%s2232_s24 + $0x60] sm:$0xff] %v1009_v63  ;;  %v926_v3 = vmul.f32 %v1663_v4, %v856_v53  ;;  %v729_v60 = vsub.f32 %v2043_v32, %v686_v35 }
 0x242   : > { %1666 = vrcp.f32 %v834_v14  ;;  %1117 = vmatmul.f32.gmra.mxu3 %v1021_v33  ;;  %1198 = vst [vmem:[%s2232_s24 + $0xc0] sm:$0xff] %v1021_v33  ;;  %v858_v7 = vpop.xlane.xlu2 %857  ;;  %v946_v45 = vsub.f32 2.0, %v914_v19 }
 0x243   : > { %1668 = vrcp.f32 %v858_v7  ;;  %v958_v25 = vsub.f32 2.0, %v926_v3  ;;  %v781_v54 = vmul.f32 1.442695, %v729_v60 }
 0x244   : > { %v978_v29 = vmul.f32 %v1661_v1, %v946_v45 }
 0x245   : > { %v2285_v41 = vpop.eup %1664  ;;  %1670 = vpow2.f32 %v781_v54  ;;  %v990_v9 = vmul.f32 %v1663_v4, %v958_v25 }
 0x246   : > { %807 = vadd.xlane.f32.xlu2 %v2285_v41  ;;  %v1010_v11 = vmul.f32 %v2186_v49, %v978_v29 }
 0x247   : > { %v1022_v23 = vmul.f32 %v2189_v52, %v990_v9 }
 0x248   : > { %v1667_v32 = vpop.eup %1666  ;;  %v836_v36 = vpop.xlane.xlu0 %835  ;;  %1187 = vst [vmem:[%s2232_s24 + $0x68] sm:$0xff] %v1010_v11 }
 0x249   : > { %v1669_v21 = vpop.eup %1668  ;;  %v915_v0 = vmul.f32 %v1667_v32, %v834_v14  ;;  %v860_v13 = vpop.xlane.xlu1 %859  ;;  %1084 = vmatmul.f32.gmra.mxu1 %v1010_v11  ;;  %1199 = vst [vmem:[%s2232_s24 + $0xc8] sm:$0xff] %v1022_v23 }
 0x24a   : > { %v927_v50 = vmul.f32 %v1669_v21, %v858_v7  ;;  %1672 = vrcp.f32 %v860_v13  ;;  %1120 = vmatmul.f32.gmra.mxu3 %v1022_v23  ;;  %v838_v30 = vpop.xlane.xlu2 %837 }
 0x24b   : > { %v947_v28 = vsub.f32 2.0, %v915_v0  ;;  %1674 = vrcp.f32 %v836_v36  ;;  %v2292_v5 = vpop.eup %1670 }
 0x24c   : > { %v959_v49 = vsub.f32 2.0, %v927_v50  ;;  %1676 = vrcp.f32 %v838_v30  ;;  %845 = vadd.xlane.f32.xlu0 %v2292_v5 }
 0x24d   : > { %v979_v52 = vmul.f32 %v1667_v32, %v947_v28 }
 0x24e   : > { %v991_v42 = vmul.f32 %v1669_v21, %v959_v49 }
 0x24f   : > { %v1011_v31 = vmul.f32 %v2200_v62, %v979_v52 }
 0x250   : > { %v1673_v8 = vpop.eup %1672  ;;  %v1023_v34 = vmul.f32 %v2202_v2, %v991_v42  ;;  %v862_v6 = vpop.xlane.xlu0 %861 }
 0x251   : > { %v1675_v46 = vpop.eup %1674  ;;  %v928_v47 = vmul.f32 %v1673_v8, %v860_v13  ;;  %v840_v15 = vpop.xlane.xlu1 %839  ;;  %1087 = vmatmul.f32.gmra.mxu1 %v1011_v31  ;;  %1188 = vst [vmem:[%s2232_s24 + $0x70] sm:$0xff] %v1011_v31 }
 0x252   : > { %v1677_v61 = vpop.eup %1676  ;;  %v916_v37 = vmul.f32 %v1675_v46, %v836_v36  ;;  %1678 = vrcp.f32 %v840_v15  ;;  %1123 = vmatmul.f32.gmra.mxu3 %v1023_v34  ;;  %1200 = vst [vmem:[%s2232_s24 + $0xd0] sm:$0xff] %v1023_v34  ;;  %v864_v12 = vpop.xlane.xlu2 %863 }
 0x253   : > { %v960_v38 = vsub.f32 2.0, %v928_v47  ;;  %v917_v51 = vmul.f32 %v1677_v61, %v838_v30  ;;  %1680 = vrcp.f32 %v862_v6 }
 0x254   : > { %v948_v62 = vsub.f32 2.0, %v916_v37  ;;  %1682 = vrcp.f32 %v864_v12 }
 0x255   : > { %v949_v2 = vsub.f32 2.0, %v917_v51  ;;  %v992_v53 = vmul.f32 %v1673_v8, %v960_v38 }
 0x256   : > { %v980_v56 = vmul.f32 %v1675_v46, %v948_v62 }
 0x257   : > { %v1024_v26 = vmul.f32 %v2212_v16, %v992_v53  ;;  %v981_v44 = vmul.f32 %v1677_v61, %v949_v2 }
 0x258   : > { %v1679_v58 = vpop.eup %1678  ;;  %v1012_v39 = vmul.f32 %v2210_v24, %v980_v56 }
 0x259   : > { %v1681_v17 = vpop.eup %1680  ;;  %v918_v40 = vmul.f32 %v1679_v58, %v840_v15  ;;  %1201 = vst [vmem:[%s2232_s24 + $0xd8] sm:$0xff] %v1024_v26  ;;  %v1013_v55 = vmul.f32 %v2214_v18, %v981_v44 }
 0x25a   : > { %v1683_v63 = vpop.eup %1682  ;;  %v929_v1 = vmul.f32 %v1681_v17, %v862_v6  ;;  %1090 = vmatmul.f32.gmra.mxu1 %v1012_v39  ;;  %1189 = vst [vmem:[%s2232_s24 + $0x78] sm:$0xff] %v1012_v39  ;;  %1126 = vmatmul.f32.gmra.mxu3 %v1024_v26 }
 0x25b   : > { %v950_v33 = vsub.f32 2.0, %v918_v40  ;;  %v930_v16 = vmul.f32 %v1683_v63, %v864_v12  ;;  %1190 = vst [vmem:[%s2232_s24 + $0x80] sm:$0xff] %v1013_v55 }
 0x25c   : > { %v961_v4 = vsub.f32 2.0, %v929_v1 }
 0x25d   : > { %v962_v19 = vsub.f32 2.0, %v930_v16  ;;  %v982_v24 = vmul.f32 %v1679_v58, %v950_v33 }
 0x25e   : > { %v993_v35 = vmul.f32 %v1681_v17, %v961_v4 }
 0x25f   : > { %v1014_v14 = vmul.f32 %v2221_v20, %v982_v24  ;;  %v994_v3 = vmul.f32 %v1683_v63, %v962_v19 }
 0x260   : > { %v1025_v18 = vmul.f32 %v2219_v43, %v993_v35 }
 0x261   : > { %1191 = vst [vmem:[%s2232_s24 + $0x88] sm:$0xff] %v1014_v14  ;;  %v1026_v60 = vmul.f32 %v2223_v22, %v994_v3 }
 0x262   : > { %1093 = vmatmul.f32.gmra.mxu1 %v1013_v55  ;;  %1129 = vmatmul.f32.gmra.mxu3 %v1025_v18  ;;  %1202 = vst [vmem:[%s2232_s24 + $0xe0] sm:$0xff] %v1025_v18 }
 0x263   : > { %1203 = vst [vmem:[%s2232_s24 + $0xe8] sm:$0xff] %v1026_v60 }
 0x265   : > { %v1052_v43 = vpop.f32.mrf.mxu1 }
 0x266   : > { %1144 = vst.msk [vmem:[%s2316_s5 + $0x10] sm:$0xff] %vm387_vm0, %v1052_v43 }
 0x26a   : > { %1096 = vmatmul.f32.gmra.mxu1 %v1014_v14  ;;  %1132 = vmatmul.f32.gmra.mxu3 %v1026_v60 }
 0x26d   : > { %v1055_v20 = vpop.f32.mrf.mxu1 }
 0x26e   : > { %1145 = vst.msk [vmem:[%s2316_s5 + $0x18] sm:$0xff] %vm387_vm0, %v1055_v20 }
 0x275   : > { %v1058_v22 = vpop.f32.mrf.mxu1 }
 0x276   : > { %1146 = vst.msk [vmem:[%s2316_s5 + $0x20] sm:$0xff] %vm387_vm0, %v1058_v22 }
 0x27d   : > { %v1061_v7 = vpop.f32.mrf.mxu1 }
 0x27e   : > { %1147 = vst.msk [vmem:[%s2316_s5 + $0x28] sm:$0xff] %vm387_vm0, %v1061_v7 }
 0x285   : > { %v1064_v45 = vpop.f32.mrf.mxu1 }
 0x286   : > { %1148 = vst.msk [vmem:[%s2316_s5 + $0x30] sm:$0xff] %vm387_vm0, %v1064_v45 }
 0x28d   : > { %v1067_v25 = vpop.f32.mrf.mxu1 }
 0x28e   : > { %1149 = vst.msk [vmem:[%s2316_s5 + $0x38] sm:$0xff] %vm387_vm0, %v1067_v25 }
 0x295   : > { %v1070_v54 = vpop.f32.mrf.mxu1 }
 0x296   : > { %1150 = vst.msk [vmem:[%s2316_s5 + $0x40] sm:$0xff] %vm387_vm0, %v1070_v54 }
 0x29e   : > { %v1073_v29 = vpop.f32.mrf.mxu1 }
 0x29f   : > { %1151 = vst.msk [vmem:[%s2316_s5 + $0x48] sm:$0xff] %vm387_vm0, %v1073_v29  ;;  %v866_v9 = vpop.xlane.xlu1 %865 }
 0x2a0   : > { %1684 = vrcp.f32 %v866_v9  ;;  %v842_v11 = vpop.xlane.xlu0 %841 }
 0x2a1   : > { %1686 = vrcp.f32 %v842_v11 }
 0x2a3   : > { %v1109_v32 = vpop.f32.mrf.mxu3 }
 0x2a4   : > { %1163 = vst.msk [vmem:[%s2316_s5 + $0xa8] sm:$0xff] %vm387_vm0, %v1109_v32 }
 0x2a6   : > { %v1685_v23 = vpop.eup %1684  ;;  %v1076_v21 = vpop.f32.mrf.mxu1 }
 0x2a7   : > { %v1687_v0 = vpop.eup %1686  ;;  %v931_v13 = vmul.f32 %v1685_v23, %v866_v9  ;;  %1152 = vst.msk [vmem:[%s2316_s5 + $0x50] sm:$0xff] %vm387_vm0, %v1076_v21 }
 0x2a8   : > { %v919_v36 = vmul.f32 %v1687_v0, %v842_v11  ;;  %v844_v50 = vpop.xlane.xlu0 %843 }
 0x2a9   : > { %v868_v30 = vpop.xlane.xlu1 %867  ;;  %v963_v28 = vsub.f32 2.0, %v931_v13  ;;  %1688 = vrcp.f32 %v844_v50 }
 0x2aa   : > { %v951_v49 = vsub.f32 2.0, %v919_v36  ;;  %1690 = vrcp.f32 %v868_v30 }
 0x2ab   : > { %v1112_v52 = vpop.f32.mrf.mxu3  ;;  %v995_v42 = vmul.f32 %v1685_v23, %v963_v28 }
 0x2ac   : > { %1164 = vst.msk [vmem:[%s2316_s5 + $0xb0] sm:$0xff] %vm387_vm0, %v1112_v52  ;;  %v983_v31 = vmul.f32 %v1687_v0, %v951_v49 }
 0x2ad   : > { %v1027_v8 = vmul.f32 %v2259_v57, %v995_v42 }
 0x2ae   : > { %v1015_v34 = vmul.f32 %v2261_v27, %v983_v31 }
 0x2af   : > { %v1689_v46 = vpop.eup %1688  ;;  %1135 = vmatmul.f32.gmra.mxu3 %v1027_v8  ;;  %1204 = vst [vmem:[%s2232_s24 + $0xf0] sm:$0xff] %v1027_v8  ;;  %v806_v47 = vpop.xlane.xlu2 %805 }
 0x2b0   : > { %v1691_v15 = vpop.eup %1690  ;;  %v920_v6 = vmul.f32 %v1689_v46, %v844_v50  ;;  %1099 = vmatmul.f32.gmra.mxu1 %v1015_v34  ;;  %1192 = vst [vmem:[%s2232_s24 + $0x90] sm:$0xff] %v1015_v34  ;;  %1692 = vrcp.f32 %v806_v47 }
 0x2b1   : > { %v932_v61 = vmul.f32 %v1691_v15, %v868_v30 }
 0x2b2   : > { %v952_v37 = vsub.f32 2.0, %v920_v6 }
 0x2b3   : > { %v964_v12 = vsub.f32 2.0, %v932_v61 }
 0x2b4   : > { %v1115_v38 = vpop.f32.mrf.mxu3  ;;  %v984_v57 = vmul.f32 %v1689_v46, %v952_v37 }
 0x2b5   : > { %1165 = vst.msk [vmem:[%s2316_s5 + $0xb8] sm:$0xff] %vm387_vm0, %v1115_v38  ;;  %v996_v27 = vmul.f32 %v1691_v15, %v964_v12  ;;  %v1079_v51 = vpop.f32.mrf.mxu1 }
 0x2b6   : > { %v1693_v62 = vpop.eup %1692  ;;  %1153 = vst.msk [vmem:[%s2316_s5 + $0x58] sm:$0xff] %vm387_vm0, %v1079_v51  ;;  %v1016_v2 = vmul.f32 %v2268_v48, %v984_v57 }
 0x2b7   : > { %v901_v53 = vmul.f32 %v1693_v62, %v806_v47  ;;  %v1028_v56 = vmul.f32 %v2270_v10, %v996_v27 }
 0x2b8   : > { %1102 = vmatmul.f32.gmra.mxu1 %v1016_v2  ;;  %1193 = vst [vmem:[%s2232_s24 + $0x98] sm:$0xff] %v1016_v2 }
 0x2b9   : > { %v808_v26 = vpop.xlane.xlu2 %807  ;;  %v933_v44 = vsub.f32 2.0, %v901_v53  ;;  %1138 = vmatmul.f32.gmra.mxu3 %v1028_v56  ;;  %1205 = vst [vmem:[%s2232_s24 + $0xf8] sm:$0xff] %v1028_v56 }
 0x2ba   : > { %1694 = vrcp.f32 %v808_v26 }
 0x2bb   : > { %v965_v58 = vmul.f32 %v1693_v62, %v933_v44 }
 0x2bd   : > { %v997_v17 = vmul.f32 %v2277_v59, %v965_v58 }
 0x2be   : > { %v1082_v39 = vpop.f32.mrf.mxu1 }
 0x2bf   : > { %1154 = vst.msk [vmem:[%s2316_s5 + $0x60] sm:$0xff] %vm387_vm0, %v1082_v39  ;;  %v846_v40 = vpop.xlane.xlu0 %845  ;;  %1045 = vmatmul.f32.vlgmr.msrb.gmra.mxu0 %v997_v17 }
 0x2c0   : > { %v1695_v48 = vpop.eup %1694  ;;  %1174 = vst [vmem:[%s2232_s24] sm:$0xff] %v997_v17  ;;  %1696 = vrcp.f32 %v846_v40 }
 0x2c1   : > { %v902_v10 = vmul.f32 %v1695_v48, %v808_v26 }
 0x2c3   : > { %v934_v55 = vsub.f32 2.0, %v902_v10 }
 0x2c5   : > { %v966_v63 = vmul.f32 %v1695_v48, %v934_v55  ;;  %v1118_v1 = vpop.f32.mrf.mxu3 }
 0x2c6   : > { %1166 = vst.msk [vmem:[%s2316_s5 + $0xc0] sm:$0xff] %vm387_vm0, %v1118_v1  ;;  %v1085_v33 = vpop.f32.mrf.mxu1  ;;  %v1697_v59 = vpop.eup %1696 }
 0x2c7   : > { %1155 = vst.msk [vmem:[%s2316_s5 + $0x68] sm:$0xff] %vm387_vm0, %v1085_v33  ;;  %v998_v16 = vmul.f32 %v2285_v41, %v966_v63  ;;  %v921_v4 = vmul.f32 %v1697_v59, %v846_v40 }
 0x2c9   : > { %1048 = vmatmul.f32.gmra.mxu0 %v998_v16  ;;  %1175 = vst [vmem:[%s2232_s24 + $0x8] sm:$0xff] %v998_v16  ;;  %v953_v19 = vsub.f32 2.0, %v921_v4 }
 0x2cb   : > { %v985_v24 = vmul.f32 %v1697_v59, %v953_v19 }
 0x2cd   : > { %v1121_v35 = vpop.f32.mrf.mxu3  ;;  %v1017_v3 = vmul.f32 %v2292_v5, %v985_v24 }
 0x2ce   : > { %1167 = vst.msk [vmem:[%s2316_s5 + $0xc8] sm:$0xff] %vm387_vm0, %v1121_v35  ;;  %v1088_v14 = vpop.f32.mrf.mxu1 }
 0x2cf   : > { %1156 = vst.msk [vmem:[%s2316_s5 + $0x70] sm:$0xff] %vm387_vm0, %v1088_v14  ;;  %1105 = vmatmul.f32.gmra.mxu1 %v1017_v3 }
 0x2d0   : > { %1194 = vst [vmem:[%s2232_s24 + $0xa0] sm:$0xff] %v1017_v3 }
 0x2d1   : > { %1725 = shalt.err (!%p1722_p5)
}
 0x2d2   : > { %s1778_s21 = smov 128   ;;  %s1779_s24 = smov 8  }
 0x2d3   : > { %1513 = dma.vmem_to_hbm [thread:$0]  (%p1845_p4), %s1235_s9, 4096, %s1237_s10, %s1216_s18, %s1778_s21, %s1778_s21, %s1779_s24  }
 0x2d5   : > { %v1124_v41 = vpop.f32.mrf.mxu3 }
 0x2d6   : > { %1168 = vst.msk [vmem:[%s2316_s5 + $0xd0] sm:$0xff] %vm387_vm0, %v1124_v41 }
 0x2d7   : > { %v1091_v5 = vpop.f32.mrf.mxu1 }
 0x2d8   : > { %1157 = vst.msk [vmem:[%s2316_s5 + $0x78] sm:$0xff] %vm387_vm0, %v1091_v5 }
 0x2dd   : > { %v1127_v18 = vpop.f32.mrf.mxu3 }
 0x2de   : > { %1169 = vst.msk [vmem:[%s2316_s5 + $0xd8] sm:$0xff] %vm387_vm0, %v1127_v18 }
 0x2df   : > { %v1094_v60 = vpop.f32.mrf.mxu1 }
 0x2e0   : > { %1158 = vst.msk [vmem:[%s2316_s5 + $0x80] sm:$0xff] %vm387_vm0, %v1094_v60 }
 0x2e5   : > { %v1130_v43 = vpop.f32.mrf.mxu3 }
 0x2e6   : > { %1170 = vst.msk [vmem:[%s2316_s5 + $0xe0] sm:$0xff] %vm387_vm0, %v1130_v43 }
 0x2e7   : > { %v1097_v20 = vpop.f32.mrf.mxu1 }
 0x2e8   : > { %1159 = vst.msk [vmem:[%s2316_s5 + $0x88] sm:$0xff] %vm387_vm0, %v1097_v20 }
 0x2ed   : > { %v1133_v22 = vpop.f32.mrf.mxu3 }
 0x2ee   : > { %1171 = vst.msk [vmem:[%s2316_s5 + $0xe8] sm:$0xff] %vm387_vm0, %v1133_v22 }
 0x32d   : > { %v1100_v7 = vpop.f32.mrf.mxu1 }
 0x32e   : > { %1160 = vst.msk [vmem:[%s2316_s5 + $0x90] sm:$0xff] %vm387_vm0, %v1100_v7 }
 0x332   : > { %v1136_v45 = vpop.f32.mrf.mxu3 }
 0x333   : > { %1172 = vst.msk [vmem:[%s2316_s5 + $0xf0] sm:$0xff] %vm387_vm0, %v1136_v45 }
 0x335   : > { %v1103_v25 = vpop.f32.mrf.mxu1 }
 0x336   : > { %1161 = vst.msk [vmem:[%s2316_s5 + $0x98] sm:$0xff] %vm387_vm0, %v1103_v25 }
 0x33c   : > { %v1139_v54 = vpop.f32.mrf.mxu3  ;;  %v1046_v29 = vpop.f32.mrf.mxu0 }
 0x33d   : > { %1173 = vst.msk [vmem:[%s2316_s5 + $0xf8] sm:$0xff] %vm387_vm0, %v1139_v54 }
 0x33e   : > { %1142 = vst.msk [vmem:[%s2316_s5] sm:$0xff] %vm387_vm0, %v1046_v29 }
 0x346   : > { %v1049_v9 = vpop.f32.mrf.mxu0 }
 0x347   : > { %1143 = vst.msk [vmem:[%s2316_s5 + $0x8] sm:$0xff] %vm387_vm0, %v1049_v9 }
 0x34c   : > { %v1106_v11 = vpop.f32.mrf.mxu1 }
 0x34d   : > { %1162 = vst.msk [vmem:[%s2316_s5 + $0xa0] sm:$0xff] %vm387_vm0, %v1106_v11 }
 0x34e PF: > { %p1519_p4 = scmp.ge.s32.totalorder %s1776_s20, 2  ;;  %s1263_s25 = sand.u32 1, %s1756_s15  }
 0x34f   : > { %s1264_s29 = scalar_lea.sflag [#allocation3], %s1263_s25 }
 0x350   : > { %p1516_p6 = pnand %p1519_p4, %p1852_p8 }
 0x352   : > { %p1517_p7 = pneg %p1516_p6 }
 0x354   : > { %1751 = dma.done.wait (%p1517_p7), %s1264_s29, 4096  }
 0x355   : > { %1753 = vsyncadd (%p1517_p7), %s1264_s29, 4294963200  ;;  %s18_s20 = sadd.s32 1, %s1776_s20   ;;  %s2442_s15 = smov %s1760_s16 }
 0x356   : > { %p15_p9 = scmp.ge.s32.totalorder %s18_s20, 4   ;;  %s2443_s16 = smov %s1764_s17 }
 0x357   : > { %s2444_s17 = smov %s1858_s28  ;;  %s2445_s18 = smov %s1772_s19 }
 0x358   : > { %s2446_s19 = smov %s2448_s23  ;;  %17 = sbr.rel (!%p15_p9) target bundleno = 4 (0x4), region = 85 }
 0x35d   :  { %1270 = vsyncpa [#allocation3], 1 }
 0x35e   :  { %1272 = vsyncpa [#allocation3 + $0x1], 1 }

</bundles_post_ra>
